<compile_context>
chip_gen: v7x
topology: tpu7x:2x2x1
jax: 0.10.0
libtpu: 0.0.40
codegen_flags: <defaults>
</compile_context>

<pallas_src>
import jax
import jax.numpy as jnp
from jax.experimental import pallas as pl
from jax.experimental.pallas import tpu as pltpu

# ----------------------------- model config ---------------------------------
VOCAB = 64
HIDDEN = 32
N_HEAD = 2
HEAD_DIM = HIDDEN // N_HEAD
N_LAYER = 2
MLP_DIM = 4 * HIDDEN
MAX_POS = 16
BATCH = 2
SEQ = 8
LN_EPS = 1e-5
LANES = 128

# packed small-parameter slab layout: one 128-lane row per vector
ROWS_PER_LAYER = 8
(R_LN1G, R_LN1B, R_LN2G, R_LN2B, R_BQKV, R_BPROJ, R_BFC, R_BOUT) = range(ROWS_PER_LAYER)
R_LNFG = N_LAYER * ROWS_PER_LAYER
R_LNFB = R_LNFG + 1
SLAB_ROWS = 24  # 18 used rows, padded to a sublane multiple


# ------------------------------ kernel ---------------------------------------
def _layernorm(x, g, b):
    x = x.astype(jnp.float32)
    mu = jnp.mean(x, axis=-1, keepdims=True)
    var = jnp.mean(jnp.square(x - mu), axis=-1, keepdims=True)
    return (x - mu) * jax.lax.rsqrt(var + LN_EPS) * g + b


def _gpt2_fused_kernel(h_ref, mask_ref, slab_ref,
                       w_qkv_ref, w_proj_ref, w_fc_ref, w_out_ref, wte_ref,
                       logits_ref, kv_ref):
    f32 = jnp.float32
    h = h_ref[...].astype(f32)          # [B*S, H]
    slab = slab_ref[...]                # [SLAB_ROWS, 128]  (all small params)
    mask = mask_ref[...]                # [B, S]

    def prow(idx, width):               # [1, width] slice of the packed slab
        return slab[idx:idx + 1, :width]

    # Causal + padding additive bias, built in-kernel per batch row.
    row = jax.lax.broadcasted_iota(jnp.int32, (SEQ, SEQ), 0)
    col = jax.lax.broadcasted_iota(jnp.int32, (SEQ, SEQ), 1)
    causal = col <= row
    biases = [jnp.where(causal & (mask[b:b + 1, :] > 0.5), 0.0, -1e9).astype(f32)
              for b in range(BATCH)]

    scale = 1.0 / float(HEAD_DIM) ** 0.5
    kv_slabs = []

    for l in range(N_LAYER):                                     # static unroll
        base = l * ROWS_PER_LAYER
        # ---- attention: LN1 -> fused qkv -> per-(batch,head) attn -> merged proj
        x = _layernorm(h, prow(base + R_LN1G, HIDDEN), prow(base + R_LN1B, HIDDEN))
        qkv = jnp.dot(x, w_qkv_ref[l], preferred_element_type=f32) \
            + prow(base + R_BQKV, 3 * HIDDEN)                     # [B*S, 3H]

        # present K/V slab for this layer (stored lane-dense once at the end)
        kv_slabs.append(qkv[:, HIDDEN:3 * HIDDEN])                # [B*S, 2H]

        o_rows = []
        for b in range(BATCH):                                    # static unroll
            r0, r1 = b * SEQ, (b + 1) * SEQ
            heads = []
            for n in range(N_HEAD):                               # static unroll
                c = n * HEAD_DIM
                q_h = qkv[r0:r1, c:c + HEAD_DIM]
                k_h = qkv[r0:r1, HIDDEN + c:HIDDEN + c + HEAD_DIM]
                v_h = qkv[r0:r1, 2 * HIDDEN + c:2 * HIDDEN + c + HEAD_DIM]
                # contract last axes of q and k (no k.T / XLU transpose)
                s = jax.lax.dot_general(q_h, k_h, (((1,), (1,)), ((), ())),
                                        preferred_element_type=f32) * scale + biases[b]
                s = s - jnp.max(s, axis=-1, keepdims=True)
                p = jnp.exp(s)
                p = p * pl.reciprocal(jnp.sum(p, axis=-1, keepdims=True), approx=True)
                heads.append(jnp.dot(p, v_h, preferred_element_type=f32))   # [S, Dh]
            o_rows.append(jnp.concatenate(heads, axis=-1))                  # [S, H]
        o = jnp.concatenate(o_rows, axis=0)                                 # [B*S, H]

        # single merged output projection + residual
        h = h + jnp.dot(o, w_proj_ref[l], preferred_element_type=f32) \
              + prow(base + R_BPROJ, HIDDEN)

        # ---- MLP: LN2 -> fc -> gelu -> out -> residual
        x = _layernorm(h, prow(base + R_LN2G, HIDDEN), prow(base + R_LN2B, HIDDEN))
        m = jnp.dot(x, w_fc_ref[l], preferred_element_type=f32) + prow(base + R_BFC, MLP_DIM)
        m = jax.nn.gelu(m, approximate=True)                      # GPT-2 tanh GELU
        h = h + jnp.dot(m, w_out_ref[l], preferred_element_type=f32) \
              + prow(base + R_BOUT, HIDDEN)

    # one lane-dense (unmasked 128-lane) store for the whole KV cache
    kv_ref[...] = jnp.concatenate(kv_slabs, axis=-1).astype(kv_ref.dtype)

    # final LN + tied-embedding LM head (wte padded to 128 rows, un-transposed)
    x = _layernorm(h, prow(R_LNFG, HIDDEN), prow(R_LNFB, HIDDEN))
    logits_ref[...] = jax.lax.dot_general(
        x, wte_ref[...], (((1,), (1,)), ((), ())),
        preferred_element_type=f32).astype(logits_ref.dtype)


def gpt2_fused(params, h_flat, mask):
    """Single pallas_call, no grid: every array is a full VMEM-resident block.
    h_flat: [B*S, H] f32; mask: [B, S] f32."""
    n_rows = h_flat.shape[0]
    vmem = lambda: pl.BlockSpec(memory_space=pltpu.MemorySpace.VMEM)
    out_shape = (
        jax.ShapeDtypeStruct((n_rows, LANES), jnp.float32),                  # padded logits
        jax.ShapeDtypeStruct((n_rows, 2 * N_LAYER * HIDDEN), jnp.float32),   # packed K/V
    )
    return pl.pallas_call(
        _gpt2_fused_kernel,
        out_shape=out_shape,
        in_specs=[vmem() for _ in range(8)],
        out_specs=(vmem(), vmem()),
    )(h_flat, mask, params["slab"],
      params["w_qkv"], params["w_proj"], params["w_fc"], params["w_out"],
      params["wte_pad"])


# --------------------------- parameter init ----------------------------------
def init_params(key):
    def nrm(k, shape, std=0.02):
        return (std * jax.random.normal(k, shape)).astype(jnp.float32)

    keys = jax.random.split(key, 2 + 4 * N_LAYER)
    ki = iter(keys)
    wte = nrm(next(ki), (VOCAB, HIDDEN))
    wpe = nrm(next(ki), (MAX_POS, HIDDEN), std=0.01)
    w_qkv, w_proj, w_fc, w_out = [], [], [], []
    for _ in range(N_LAYER):
        w_qkv.append(nrm(next(ki), (HIDDEN, 3 * HIDDEN)))
        w_proj.append(nrm(next(ki), (HIDDEN, HIDDEN)))
        w_fc.append(nrm(next(ki), (HIDDEN, MLP_DIM)))
        w_out.append(nrm(next(ki), (MLP_DIM, HIDDEN)))
    return {
        "wte": wte,
        "wpe": wpe,
        "ln1_g": jnp.ones((N_LAYER, 1, HIDDEN), jnp.float32),
        "ln1_b": jnp.zeros((N_LAYER, 1, HIDDEN), jnp.float32),
        "ln2_g": jnp.ones((N_LAYER, 1, HIDDEN), jnp.float32),
        "ln2_b": jnp.zeros((N_LAYER, 1, HIDDEN), jnp.float32),
        "lnf_g": jnp.ones((1, HIDDEN), jnp.float32),
        "lnf_b": jnp.zeros((1, HIDDEN), jnp.float32),
        "w_qkv": jnp.stack(w_qkv),
        "b_qkv": jnp.zeros((N_LAYER, 1, 3 * HIDDEN), jnp.float32),
        "w_proj": jnp.stack(w_proj),
        "b_proj": jnp.zeros((N_LAYER, 1, HIDDEN), jnp.float32),
        "w_fc": jnp.stack(w_fc),
        "b_fc": jnp.zeros((N_LAYER, 1, MLP_DIM), jnp.float32),
        "w_out": jnp.stack(w_out),
        "b_out": jnp.zeros((N_LAYER, 1, HIDDEN), jnp.float32),
    }


def pack_params(params):
    """Pack all sub-KiB parameters into one [SLAB_ROWS, 128] slab (one DMA)
    and zero-pad wte to 128 rows for a lane-dense LM-head output."""
    def pad_row(v):
        v = jnp.asarray(v, jnp.float32).reshape(-1)
        return jnp.pad(v, (0, LANES - v.shape[0]))

    rows = []
    for l in range(N_LAYER):
        rows += [
            pad_row(params["ln1_g"][l]), pad_row(params["ln1_b"][l]),
            pad_row(params["ln2_g"][l]), pad_row(params["ln2_b"][l]),
            pad_row(params["b_qkv"][l]), pad_row(params["b_proj"][l]),
            pad_row(params["b_fc"][l]), pad_row(params["b_out"][l]),
        ]
    rows += [pad_row(params["lnf_g"]), pad_row(params["lnf_b"])]
    slab = jnp.stack(rows)
    slab = jnp.pad(slab, ((0, SLAB_ROWS - slab.shape[0]), (0, 0)))
    wte_pad = jnp.pad(params["wte"], ((0, LANES - VOCAB), (0, 0)))
    return {"slab": slab, "wte_pad": wte_pad}


# ------------------------------ forward ---------------------------------------
def positional_adaptor_forward(params, input_ids, position_ids, attention_mask,
                               past_key_values=None):
    """Mirrors _PositionalAdaptor.forward: model(input_ids, position_ids,
    attention_mask, past_key_values, use_cache=True, return_dict=True)."""
    # TODO(synk): past_key_values concatenation (incremental decode cache) is
    # not implemented; this covers the prefill (past_key_values=None) path.
    B, S = input_ids.shape

    # Data-dependent embedding gathers kept as plain-JAX glue; batch is folded
    # onto sublanes ([B*S, H]) before entering the kernel (free reshape).
    h = (params["wte"][input_ids] + params["wpe"][position_ids]).reshape(B * S, HIDDEN)
    mask = attention_mask.astype(jnp.float32)                       # [B, S]

    logits_pad, kv = gpt2_fused(params, h, mask)

    logits = logits_pad[:, :VOCAB].reshape(B, S, VOCAB)

    # [B*S, 2*L*H] -> HF per-layer (k, v) in [B, nH, S, Dh] layout.
    kv = kv.reshape(B, S, N_LAYER, 2, N_HEAD, HEAD_DIM)
    presents = tuple(
        (kv[:, :, l, 0].transpose(0, 2, 1, 3), kv[:, :, l, 1].transpose(0, 2, 1, 3))
        for l in range(N_LAYER)
    )

    # return_dict=True / use_cache=True equivalent.
    return {"logits": logits, "past_key_values": presents}


# ------------------------- pure-JAX reference ---------------------------------
def reference_forward(params, input_ids, position_ids, attention_mask):
    B, S = input_ids.shape
    h = params["wte"][input_ids] + params["wpe"][position_ids]
    causal = jnp.tril(jnp.ones((S, S), jnp.float32))
    pad = attention_mask.astype(jnp.float32)[:, None, :]
    bias = jnp.where(causal[None] * pad > 0, 0.0, -1e9)            # [B, S, S]

    def ln(x, g, b):
        mu = x.mean(-1, keepdims=True)
        var = ((x - mu) ** 2).mean(-1, keepdims=True)
        return (x - mu) / jnp.sqrt(var + LN_EPS) * g + b

    for l in range(N_LAYER):
        x = ln(h, params["ln1_g"][l], params["ln1_b"][l])
        qkv = x @ params["w_qkv"][l] + params["b_qkv"][l]
        q, k, v = jnp.split(qkv, 3, axis=-1)
        split = lambda t: t.reshape(B, S, N_HEAD, HEAD_DIM).transpose(0, 2, 1, 3)
        qh, kh, vh = split(q), split(k), split(v)
        s = jnp.einsum("bhqd,bhkd->bhqk", qh, kh) / HEAD_DIM ** 0.5 + bias[:, None]
        p = jax.nn.softmax(s, axis=-1)
        o = jnp.einsum("bhqk,bhkd->bhqd", p, vh)
        o = o.transpose(0, 2, 1, 3).reshape(B, S, HIDDEN)
        h = h + o @ params["w_proj"][l] + params["b_proj"][l]
        x = ln(h, params["ln2_g"][l], params["ln2_b"][l])
        m = jax.nn.gelu(x @ params["w_fc"][l] + params["b_fc"][l], approximate=True)
        h = h + m @ params["w_out"][l] + params["b_out"][l]
    x = ln(h, params["lnf_g"], params["lnf_b"])
    return x @ params["wte"].T


# -------------------------------- main ----------------------------------------
if __name__ == "__main__":
    key = jax.random.PRNGKey(0)
    k_params, k_ids = jax.random.split(key)

    params = init_params(k_params)
    params.update(pack_params(params))

    input_ids = jax.random.randint(k_ids, (BATCH, SEQ), 0, VOCAB, dtype=jnp.int32)
    position_ids = jnp.broadcast_to(jnp.arange(SEQ, dtype=jnp.int32), (BATCH, SEQ))
    attention_mask = jnp.ones((BATCH, SEQ), jnp.int32).at[1, :2].set(0)  # pad 2 tokens

    forward = jax.jit(positional_adaptor_forward)
    out = forward(params, input_ids, position_ids, attention_mask)
    jax.block_until_ready(out["logits"])
    jax.block_until_ready(out["past_key_values"])

    # shape checks (use_cache=True / return_dict=True contract)
    assert out["logits"].shape == (BATCH, SEQ, VOCAB)
    assert len(out["past_key_values"]) == N_LAYER
    assert out["past_key_values"][0][0].shape == (BATCH, N_HEAD, SEQ, HEAD_DIM)

    # numerical check vs. pure-JAX reference
    ref_logits = reference_forward(params, input_ids, position_ids, attention_mask)
    max_err = float(jnp.max(jnp.abs(out["logits"] - ref_logits)))
    assert max_err < 1e-2, f"logits mismatch: max abs err {max_err}"

    print("KERNEL_OK")
</pallas_src>

<mosaic_0001>
module attributes {stable_mosaic.version = 11 : i64} {
  func.func @_gpt2_fused_kernel(%arg0: memref<16x32xf32, #tpu.memory_space<vmem>>, %arg1: memref<2x8xf32, #tpu.memory_space<vmem>>, %arg2: memref<24x128xf32, #tpu.memory_space<vmem>>, %arg3: memref<2x32x96xf32, #tpu.memory_space<vmem>>, %arg4: memref<2x32x32xf32, #tpu.memory_space<vmem>>, %arg5: memref<2x32x128xf32, #tpu.memory_space<vmem>>, %arg6: memref<2x128x32xf32, #tpu.memory_space<vmem>>, %arg7: memref<128x32xf32, #tpu.memory_space<vmem>>, %arg8: memref<16x128xf32, #tpu.memory_space<vmem>>, %arg9: memref<16x128xf32, #tpu.memory_space<vmem>>) attributes {dimension_semantics = [], scalar_prefetch = 0 : i64, scratch_operands = 0 : i64, tpu.core_type = #tpu.core_type<tc>} {
    %c0 = arith.constant 0 : index
    %c0_0 = arith.constant 0 : index
    %0 = vector.load %arg0[%c0, %c0_0] : memref<16x32xf32, #tpu.memory_space<vmem>>, vector<16x32xf32>
    %c0_1 = arith.constant 0 : index
    %c0_2 = arith.constant 0 : index
    %1 = vector.load %arg2[%c0_1, %c0_2] : memref<24x128xf32, #tpu.memory_space<vmem>>, vector<24x128xf32>
    %c0_3 = arith.constant 0 : index
    %c0_4 = arith.constant 0 : index
    %2 = vector.load %arg1[%c0_3, %c0_4] : memref<2x8xf32, #tpu.memory_space<vmem>>, vector<2x8xf32>
    %3 = tpu.iota {dimensions = array<i32: 0>} : vector<8x8xi32>
    %4 = tpu.iota {dimensions = array<i32: 1>} : vector<8x8xi32>
    %5 = arith.cmpi sle, %4, %3 : vector<8x8xi32>
    %6 = vector.extract_strided_slice %2 {offsets = [0, 0], sizes = [1, 8], strides = [1, 1]} : vector<2x8xf32> to vector<1x8xf32>
    %cst = arith.constant 5.000000e-01 : f32
    %7 = vector.broadcast %cst : f32 to vector<1x8xf32>
    %8 = arith.cmpf ogt, %6, %7 : vector<1x8xf32>
    %9 = vector.broadcast %8 : vector<1x8xi1> to vector<8x8xi1>
    %10 = arith.andi %5, %9 : vector<8x8xi1>
    %cst_5 = arith.constant 0.000000e+00 : f32
    %cst_6 = arith.constant -1.000000e+09 : f32
    %11 = vector.broadcast %cst_5 : f32 to vector<8x8xf32>
    %12 = vector.broadcast %cst_6 : f32 to vector<8x8xf32>
    %13 = arith.select %10, %11, %12 : vector<8x8xi1>, vector<8x8xf32>
    %14 = vector.extract_strided_slice %2 {offsets = [1, 0], sizes = [1, 8], strides = [1, 1]} : vector<2x8xf32> to vector<1x8xf32>
    %cst_7 = arith.constant 5.000000e-01 : f32
    %15 = vector.broadcast %cst_7 : f32 to vector<1x8xf32>
    %16 = arith.cmpf ogt, %14, %15 : vector<1x8xf32>
    %17 = vector.broadcast %16 : vector<1x8xi1> to vector<8x8xi1>
    %18 = arith.andi %5, %17 : vector<8x8xi1>
    %cst_8 = arith.constant 0.000000e+00 : f32
    %cst_9 = arith.constant -1.000000e+09 : f32
    %19 = vector.broadcast %cst_8 : f32 to vector<8x8xf32>
    %20 = vector.broadcast %cst_9 : f32 to vector<8x8xf32>
    %21 = arith.select %18, %19, %20 : vector<8x8xi1>, vector<8x8xf32>
    %22 = vector.extract_strided_slice %1 {offsets = [0, 0], sizes = [1, 32], strides = [1, 1]} : vector<24x128xf32> to vector<1x32xf32>
    %23 = vector.extract_strided_slice %1 {offsets = [1, 0], sizes = [1, 32], strides = [1, 1]} : vector<24x128xf32> to vector<1x32xf32>
    %cst_10 = arith.constant dense<0.000000e+00> : vector<16xf32>
    %24 = vector.multi_reduction <add>, %0, %cst_10 [1] : vector<16x32xf32> to vector<16xf32>
    %25 = vector.shape_cast %24 : vector<16xf32> to vector<16x1xf32>
    %cst_11 = arith.constant 3.200000e+01 : f32
    %26 = vector.broadcast %cst_11 : f32 to vector<16x1xf32>
    %27 = arith.divf %25, %26 : vector<16x1xf32>
    %28 = vector.broadcast %27 : vector<16x1xf32> to vector<16x32xf32>
    %29 = arith.subf %0, %28 : vector<16x32xf32>
    %30 = arith.mulf %29, %29 : vector<16x32xf32>
    %cst_12 = arith.constant dense<0.000000e+00> : vector<16xf32>
    %31 = vector.multi_reduction <add>, %30, %cst_12 [1] : vector<16x32xf32> to vector<16xf32>
    %32 = vector.shape_cast %31 : vector<16xf32> to vector<16x1xf32>
    %cst_13 = arith.constant 3.200000e+01 : f32
    %33 = vector.broadcast %cst_13 : f32 to vector<16x1xf32>
    %34 = arith.divf %32, %33 : vector<16x1xf32>
    %35 = vector.broadcast %27 : vector<16x1xf32> to vector<16x32xf32>
    %36 = arith.subf %0, %35 : vector<16x32xf32>
    %cst_14 = arith.constant 9.99999974E-6 : f32
    %37 = vector.broadcast %cst_14 : f32 to vector<16x1xf32>
    %38 = arith.addf %34, %37 : vector<16x1xf32>
    %39 = math.rsqrt %38 : vector<16x1xf32>
    %40 = vector.broadcast %39 : vector<16x1xf32> to vector<16x32xf32>
    %41 = arith.mulf %36, %40 : vector<16x32xf32>
    %42 = vector.broadcast %22 : vector<1x32xf32> to vector<16x32xf32>
    %43 = arith.mulf %41, %42 : vector<16x32xf32>
    %44 = vector.broadcast %23 : vector<1x32xf32> to vector<16x32xf32>
    %45 = arith.addf %43, %44 : vector<16x32xf32>
    %c0_15 = arith.constant 0 : index
    %c0_16 = arith.constant 0 : index
    %c0_17 = arith.constant 0 : index
    %46 = vector.load %arg3[%c0_15, %c0_16, %c0_17] : memref<2x32x96xf32, #tpu.memory_space<vmem>>, vector<1x32x96xf32>
    %47 = vector.shape_cast %46 : vector<1x32x96xf32> to vector<32x96xf32>
    %cst_18 = arith.constant dense<0.000000e+00> : vector<16x96xf32>
    %48 = tpu.matmul %45, %47, %cst_18 {dimension_numbers = #tpu.dot_dimension_numbers<[1], [0], [0], [1], [0, 0, 1, 1], [], []>} : vector<16x32xf32>, vector<32x96xf32>, vector<16x96xf32> -> vector<16x96xf32>
    %49 = vector.extract_strided_slice %1 {offsets = [4, 0], sizes = [1, 96], strides = [1, 1]} : vector<24x128xf32> to vector<1x96xf32>
    %50 = vector.broadcast %49 : vector<1x96xf32> to vector<16x96xf32>
    %51 = arith.addf %48, %50 : vector<16x96xf32>
    %52 = vector.extract_strided_slice %51 {offsets = [0, 32], sizes = [16, 64], strides = [1, 1]} : vector<16x96xf32> to vector<16x64xf32>
    %53 = vector.extract_strided_slice %51 {offsets = [0, 0], sizes = [8, 16], strides = [1, 1]} : vector<16x96xf32> to vector<8x16xf32>
    %54 = vector.extract_strided_slice %51 {offsets = [0, 32], sizes = [8, 16], strides = [1, 1]} : vector<16x96xf32> to vector<8x16xf32>
    %55 = vector.extract_strided_slice %51 {offsets = [0, 64], sizes = [8, 16], strides = [1, 1]} : vector<16x96xf32> to vector<8x16xf32>
    %cst_19 = arith.constant dense<0.000000e+00> : vector<8x8xf32>
    %56 = tpu.matmul %53, %54, %cst_19 {dimension_numbers = #tpu.dot_dimension_numbers<[1], [1], [0], [0], [0, 0, 1, 0], [], []>} : vector<8x16xf32>, vector<8x16xf32>, vector<8x8xf32> -> vector<8x8xf32>
    %cst_20 = arith.constant 2.500000e-01 : f32
    %57 = vector.broadcast %cst_20 : f32 to vector<8x8xf32>
    %58 = arith.mulf %56, %57 : vector<8x8xf32>
    %59 = arith.addf %58, %13 : vector<8x8xf32>
    %cst_21 = arith.constant dense<0xFF800000> : vector<8xf32>
    %60 = vector.multi_reduction <maximumf>, %59, %cst_21 [1] : vector<8x8xf32> to vector<8xf32>
    %61 = vector.shape_cast %60 : vector<8xf32> to vector<8x1xf32>
    %62 = vector.broadcast %61 : vector<8x1xf32> to vector<8x8xf32>
    %63 = arith.subf %59, %62 : vector<8x8xf32>
    %64 = math.exp %63 : vector<8x8xf32>
    %cst_22 = arith.constant dense<0.000000e+00> : vector<8xf32>
    %65 = vector.multi_reduction <add>, %64, %cst_22 [1] : vector<8x8xf32> to vector<8xf32>
    %66 = vector.shape_cast %65 : vector<8xf32> to vector<8x1xf32>
    %67 = tpu.reciprocal %66 {approx = true} : vector<8x1xf32> -> vector<8x1xf32>
    %68 = vector.broadcast %67 : vector<8x1xf32> to vector<8x8xf32>
    %69 = arith.mulf %64, %68 : vector<8x8xf32>
    %cst_23 = arith.constant dense<0.000000e+00> : vector<8x16xf32>
    %70 = tpu.matmul %69, %55, %cst_23 {dimension_numbers = #tpu.dot_dimension_numbers<[1], [0], [0], [1], [0, 0, 1, 1], [], []>} : vector<8x8xf32>, vector<8x16xf32>, vector<8x16xf32> -> vector<8x16xf32>
    %71 = vector.extract_strided_slice %51 {offsets = [0, 16], sizes = [8, 16], strides = [1, 1]} : vector<16x96xf32> to vector<8x16xf32>
    %72 = vector.extract_strided_slice %51 {offsets = [0, 48], sizes = [8, 16], strides = [1, 1]} : vector<16x96xf32> to vector<8x16xf32>
    %73 = vector.extract_strided_slice %51 {offsets = [0, 80], sizes = [8, 16], strides = [1, 1]} : vector<16x96xf32> to vector<8x16xf32>
    %cst_24 = arith.constant dense<0.000000e+00> : vector<8x8xf32>
    %74 = tpu.matmul %71, %72, %cst_24 {dimension_numbers = #tpu.dot_dimension_numbers<[1], [1], [0], [0], [0, 0, 1, 0], [], []>} : vector<8x16xf32>, vector<8x16xf32>, vector<8x8xf32> -> vector<8x8xf32>
    %cst_25 = arith.constant 2.500000e-01 : f32
    %75 = vector.broadcast %cst_25 : f32 to vector<8x8xf32>
    %76 = arith.mulf %74, %75 : vector<8x8xf32>
    %77 = arith.addf %76, %13 : vector<8x8xf32>
    %cst_26 = arith.constant dense<0xFF800000> : vector<8xf32>
    %78 = vector.multi_reduction <maximumf>, %77, %cst_26 [1] : vector<8x8xf32> to vector<8xf32>
    %79 = vector.shape_cast %78 : vector<8xf32> to vector<8x1xf32>
    %80 = vector.broadcast %79 : vector<8x1xf32> to vector<8x8xf32>
    %81 = arith.subf %77, %80 : vector<8x8xf32>
    %82 = math.exp %81 : vector<8x8xf32>
    %cst_27 = arith.constant dense<0.000000e+00> : vector<8xf32>
    %83 = vector.multi_reduction <add>, %82, %cst_27 [1] : vector<8x8xf32> to vector<8xf32>
    %84 = vector.shape_cast %83 : vector<8xf32> to vector<8x1xf32>
    %85 = tpu.reciprocal %84 {approx = true} : vector<8x1xf32> -> vector<8x1xf32>
    %86 = vector.broadcast %85 : vector<8x1xf32> to vector<8x8xf32>
    %87 = arith.mulf %82, %86 : vector<8x8xf32>
    %cst_28 = arith.constant dense<0.000000e+00> : vector<8x16xf32>
    %88 = tpu.matmul %87, %73, %cst_28 {dimension_numbers = #tpu.dot_dimension_numbers<[1], [0], [0], [1], [0, 0, 1, 1], [], []>} : vector<8x8xf32>, vector<8x16xf32>, vector<8x16xf32> -> vector<8x16xf32>
    %89 = tpu.concatenate %70, %88 in 1 : vector<8x16xf32>, vector<8x16xf32> -> vector<8x32xf32>
    %90 = vector.extract_strided_slice %51 {offsets = [8, 0], sizes = [8, 16], strides = [1, 1]} : vector<16x96xf32> to vector<8x16xf32>
    %91 = vector.extract_strided_slice %51 {offsets = [8, 32], sizes = [8, 16], strides = [1, 1]} : vector<16x96xf32> to vector<8x16xf32>
    %92 = vector.extract_strided_slice %51 {offsets = [8, 64], sizes = [8, 16], strides = [1, 1]} : vector<16x96xf32> to vector<8x16xf32>
    %cst_29 = arith.constant dense<0.000000e+00> : vector<8x8xf32>
    %93 = tpu.matmul %90, %91, %cst_29 {dimension_numbers = #tpu.dot_dimension_numbers<[1], [1], [0], [0], [0, 0, 1, 0], [], []>} : vector<8x16xf32>, vector<8x16xf32>, vector<8x8xf32> -> vector<8x8xf32>
    %cst_30 = arith.constant 2.500000e-01 : f32
    %94 = vector.broadcast %cst_30 : f32 to vector<8x8xf32>
    %95 = arith.mulf %93, %94 : vector<8x8xf32>
    %96 = arith.addf %95, %21 : vector<8x8xf32>
    %cst_31 = arith.constant dense<0xFF800000> : vector<8xf32>
    %97 = vector.multi_reduction <maximumf>, %96, %cst_31 [1] : vector<8x8xf32> to vector<8xf32>
    %98 = vector.shape_cast %97 : vector<8xf32> to vector<8x1xf32>
    %99 = vector.broadcast %98 : vector<8x1xf32> to vector<8x8xf32>
    %100 = arith.subf %96, %99 : vector<8x8xf32>
    %101 = math.exp %100 : vector<8x8xf32>
    %cst_32 = arith.constant dense<0.000000e+00> : vector<8xf32>
    %102 = vector.multi_reduction <add>, %101, %cst_32 [1] : vector<8x8xf32> to vector<8xf32>
    %103 = vector.shape_cast %102 : vector<8xf32> to vector<8x1xf32>
    %104 = tpu.reciprocal %103 {approx = true} : vector<8x1xf32> -> vector<8x1xf32>
    %105 = vector.broadcast %104 : vector<8x1xf32> to vector<8x8xf32>
    %106 = arith.mulf %101, %105 : vector<8x8xf32>
    %cst_33 = arith.constant dense<0.000000e+00> : vector<8x16xf32>
    %107 = tpu.matmul %106, %92, %cst_33 {dimension_numbers = #tpu.dot_dimension_numbers<[1], [0], [0], [1], [0, 0, 1, 1], [], []>} : vector<8x8xf32>, vector<8x16xf32>, vector<8x16xf32> -> vector<8x16xf32>
    %108 = vector.extract_strided_slice %51 {offsets = [8, 16], sizes = [8, 16], strides = [1, 1]} : vector<16x96xf32> to vector<8x16xf32>
    %109 = vector.extract_strided_slice %51 {offsets = [8, 48], sizes = [8, 16], strides = [1, 1]} : vector<16x96xf32> to vector<8x16xf32>
    %110 = vector.extract_strided_slice %51 {offsets = [8, 80], sizes = [8, 16], strides = [1, 1]} : vector<16x96xf32> to vector<8x16xf32>
    %cst_34 = arith.constant dense<0.000000e+00> : vector<8x8xf32>
    %111 = tpu.matmul %108, %109, %cst_34 {dimension_numbers = #tpu.dot_dimension_numbers<[1], [1], [0], [0], [0, 0, 1, 0], [], []>} : vector<8x16xf32>, vector<8x16xf32>, vector<8x8xf32> -> vector<8x8xf32>
    %cst_35 = arith.constant 2.500000e-01 : f32
    %112 = vector.broadcast %cst_35 : f32 to vector<8x8xf32>
    %113 = arith.mulf %111, %112 : vector<8x8xf32>
    %114 = arith.addf %113, %21 : vector<8x8xf32>
    %cst_36 = arith.constant dense<0xFF800000> : vector<8xf32>
    %115 = vector.multi_reduction <maximumf>, %114, %cst_36 [1] : vector<8x8xf32> to vector<8xf32>
    %116 = vector.shape_cast %115 : vector<8xf32> to vector<8x1xf32>
    %117 = vector.broadcast %116 : vector<8x1xf32> to vector<8x8xf32>
    %118 = arith.subf %114, %117 : vector<8x8xf32>
    %119 = math.exp %118 : vector<8x8xf32>
    %cst_37 = arith.constant dense<0.000000e+00> : vector<8xf32>
    %120 = vector.multi_reduction <add>, %119, %cst_37 [1] : vector<8x8xf32> to vector<8xf32>
    %121 = vector.shape_cast %120 : vector<8xf32> to vector<8x1xf32>
    %122 = tpu.reciprocal %121 {approx = true} : vector<8x1xf32> -> vector<8x1xf32>
    %123 = vector.broadcast %122 : vector<8x1xf32> to vector<8x8xf32>
    %124 = arith.mulf %119, %123 : vector<8x8xf32>
    %cst_38 = arith.constant dense<0.000000e+00> : vector<8x16xf32>
    %125 = tpu.matmul %124, %110, %cst_38 {dimension_numbers = #tpu.dot_dimension_numbers<[1], [0], [0], [1], [0, 0, 1, 1], [], []>} : vector<8x8xf32>, vector<8x16xf32>, vector<8x16xf32> -> vector<8x16xf32>
    %126 = tpu.concatenate %107, %125 in 1 : vector<8x16xf32>, vector<8x16xf32> -> vector<8x32xf32>
    %127 = tpu.concatenate %89, %126 in 0 : vector<8x32xf32>, vector<8x32xf32> -> vector<16x32xf32>
    %c0_39 = arith.constant 0 : index
    %c0_40 = arith.constant 0 : index
    %c0_41 = arith.constant 0 : index
    %128 = vector.load %arg4[%c0_39, %c0_40, %c0_41] : memref<2x32x32xf32, #tpu.memory_space<vmem>>, vector<1x32x32xf32>
    %129 = vector.shape_cast %128 : vector<1x32x32xf32> to vector<32x32xf32>
    %cst_42 = arith.constant dense<0.000000e+00> : vector<16x32xf32>
    %130 = tpu.matmul %127, %129, %cst_42 {dimension_numbers = #tpu.dot_dimension_numbers<[1], [0], [0], [1], [0, 0, 1, 1], [], []>} : vector<16x32xf32>, vector<32x32xf32>, vector<16x32xf32> -> vector<16x32xf32>
    %131 = arith.addf %0, %130 : vector<16x32xf32>
    %132 = vector.extract_strided_slice %1 {offsets = [5, 0], sizes = [1, 32], strides = [1, 1]} : vector<24x128xf32> to vector<1x32xf32>
    %133 = vector.broadcast %132 : vector<1x32xf32> to vector<16x32xf32>
    %134 = arith.addf %131, %133 : vector<16x32xf32>
    %135 = vector.extract_strided_slice %1 {offsets = [2, 0], sizes = [1, 32], strides = [1, 1]} : vector<24x128xf32> to vector<1x32xf32>
    %136 = vector.extract_strided_slice %1 {offsets = [3, 0], sizes = [1, 32], strides = [1, 1]} : vector<24x128xf32> to vector<1x32xf32>
    %cst_43 = arith.constant dense<0.000000e+00> : vector<16xf32>
    %137 = vector.multi_reduction <add>, %134, %cst_43 [1] : vector<16x32xf32> to vector<16xf32>
    %138 = vector.shape_cast %137 : vector<16xf32> to vector<16x1xf32>
    %cst_44 = arith.constant 3.200000e+01 : f32
    %139 = vector.broadcast %cst_44 : f32 to vector<16x1xf32>
    %140 = arith.divf %138, %139 : vector<16x1xf32>
    %141 = vector.broadcast %140 : vector<16x1xf32> to vector<16x32xf32>
    %142 = arith.subf %134, %141 : vector<16x32xf32>
    %143 = arith.mulf %142, %142 : vector<16x32xf32>
    %cst_45 = arith.constant dense<0.000000e+00> : vector<16xf32>
    %144 = vector.multi_reduction <add>, %143, %cst_45 [1] : vector<16x32xf32> to vector<16xf32>
    %145 = vector.shape_cast %144 : vector<16xf32> to vector<16x1xf32>
    %cst_46 = arith.constant 3.200000e+01 : f32
    %146 = vector.broadcast %cst_46 : f32 to vector<16x1xf32>
    %147 = arith.divf %145, %146 : vector<16x1xf32>
    %148 = vector.broadcast %140 : vector<16x1xf32> to vector<16x32xf32>
    %149 = arith.subf %134, %148 : vector<16x32xf32>
    %cst_47 = arith.constant 9.99999974E-6 : f32
    %150 = vector.broadcast %cst_47 : f32 to vector<16x1xf32>
    %151 = arith.addf %147, %150 : vector<16x1xf32>
    %152 = math.rsqrt %151 : vector<16x1xf32>
    %153 = vector.broadcast %152 : vector<16x1xf32> to vector<16x32xf32>
    %154 = arith.mulf %149, %153 : vector<16x32xf32>
    %155 = vector.broadcast %135 : vector<1x32xf32> to vector<16x32xf32>
    %156 = arith.mulf %154, %155 : vector<16x32xf32>
    %157 = vector.broadcast %136 : vector<1x32xf32> to vector<16x32xf32>
    %158 = arith.addf %156, %157 : vector<16x32xf32>
    %c0_48 = arith.constant 0 : index
    %c0_49 = arith.constant 0 : index
    %c0_50 = arith.constant 0 : index
    %159 = vector.load %arg5[%c0_48, %c0_49, %c0_50] : memref<2x32x128xf32, #tpu.memory_space<vmem>>, vector<1x32x128xf32>
    %160 = vector.shape_cast %159 : vector<1x32x128xf32> to vector<32x128xf32>
    %cst_51 = arith.constant dense<0.000000e+00> : vector<16x128xf32>
    %161 = tpu.matmul %158, %160, %cst_51 {dimension_numbers = #tpu.dot_dimension_numbers<[1], [0], [0], [1], [0, 0, 1, 1], [], []>} : vector<16x32xf32>, vector<32x128xf32>, vector<16x128xf32> -> vector<16x128xf32>
    %162 = vector.extract_strided_slice %1 {offsets = [6, 0], sizes = [1, 128], strides = [1, 1]} : vector<24x128xf32> to vector<1x128xf32>
    %163 = vector.broadcast %162 : vector<1x128xf32> to vector<16x128xf32>
    %164 = arith.addf %161, %163 : vector<16x128xf32>
    %165 = arith.mulf %164, %164 : vector<16x128xf32>
    %166 = arith.mulf %164, %165 : vector<16x128xf32>
    %cst_52 = arith.constant 4.471500e-02 : f32
    %167 = vector.broadcast %cst_52 : f32 to vector<16x128xf32>
    %168 = arith.mulf %167, %166 : vector<16x128xf32>
    %169 = arith.addf %164, %168 : vector<16x128xf32>
    %cst_53 = arith.constant 0.797884583 : f32
    %170 = vector.broadcast %cst_53 : f32 to vector<16x128xf32>
    %171 = arith.mulf %170, %169 : vector<16x128xf32>
    %172 = math.tanh %171 : vector<16x128xf32>
    %cst_54 = arith.constant 1.000000e+00 : f32
    %173 = vector.broadcast %cst_54 : f32 to vector<16x128xf32>
    %174 = arith.addf %173, %172 : vector<16x128xf32>
    %cst_55 = arith.constant 5.000000e-01 : f32
    %175 = vector.broadcast %cst_55 : f32 to vector<16x128xf32>
    %176 = arith.mulf %175, %174 : vector<16x128xf32>
    %177 = arith.mulf %164, %176 : vector<16x128xf32>
    %c0_56 = arith.constant 0 : index
    %c0_57 = arith.constant 0 : index
    %c0_58 = arith.constant 0 : index
    %178 = vector.load %arg6[%c0_56, %c0_57, %c0_58] : memref<2x128x32xf32, #tpu.memory_space<vmem>>, vector<1x128x32xf32>
    %179 = vector.shape_cast %178 : vector<1x128x32xf32> to vector<128x32xf32>
    %cst_59 = arith.constant dense<0.000000e+00> : vector<16x32xf32>
    %180 = tpu.matmul %177, %179, %cst_59 {dimension_numbers = #tpu.dot_dimension_numbers<[1], [0], [0], [1], [0, 0, 1, 1], [], []>} : vector<16x128xf32>, vector<128x32xf32>, vector<16x32xf32> -> vector<16x32xf32>
    %181 = arith.addf %134, %180 : vector<16x32xf32>
    %182 = vector.extract_strided_slice %1 {offsets = [7, 0], sizes = [1, 32], strides = [1, 1]} : vector<24x128xf32> to vector<1x32xf32>
    %183 = vector.broadcast %182 : vector<1x32xf32> to vector<16x32xf32>
    %184 = arith.addf %181, %183 : vector<16x32xf32>
    %185 = vector.extract_strided_slice %1 {offsets = [8, 0], sizes = [1, 32], strides = [1, 1]} : vector<24x128xf32> to vector<1x32xf32>
    %186 = vector.extract_strided_slice %1 {offsets = [9, 0], sizes = [1, 32], strides = [1, 1]} : vector<24x128xf32> to vector<1x32xf32>
    %cst_60 = arith.constant dense<0.000000e+00> : vector<16xf32>
    %187 = vector.multi_reduction <add>, %184, %cst_60 [1] : vector<16x32xf32> to vector<16xf32>
    %188 = vector.shape_cast %187 : vector<16xf32> to vector<16x1xf32>
    %cst_61 = arith.constant 3.200000e+01 : f32
    %189 = vector.broadcast %cst_61 : f32 to vector<16x1xf32>
    %190 = arith.divf %188, %189 : vector<16x1xf32>
    %191 = vector.broadcast %190 : vector<16x1xf32> to vector<16x32xf32>
    %192 = arith.subf %184, %191 : vector<16x32xf32>
    %193 = arith.mulf %192, %192 : vector<16x32xf32>
    %cst_62 = arith.constant dense<0.000000e+00> : vector<16xf32>
    %194 = vector.multi_reduction <add>, %193, %cst_62 [1] : vector<16x32xf32> to vector<16xf32>
    %195 = vector.shape_cast %194 : vector<16xf32> to vector<16x1xf32>
    %cst_63 = arith.constant 3.200000e+01 : f32
    %196 = vector.broadcast %cst_63 : f32 to vector<16x1xf32>
    %197 = arith.divf %195, %196 : vector<16x1xf32>
    %198 = vector.broadcast %190 : vector<16x1xf32> to vector<16x32xf32>
    %199 = arith.subf %184, %198 : vector<16x32xf32>
    %cst_64 = arith.constant 9.99999974E-6 : f32
    %200 = vector.broadcast %cst_64 : f32 to vector<16x1xf32>
    %201 = arith.addf %197, %200 : vector<16x1xf32>
    %202 = math.rsqrt %201 : vector<16x1xf32>
    %203 = vector.broadcast %202 : vector<16x1xf32> to vector<16x32xf32>
    %204 = arith.mulf %199, %203 : vector<16x32xf32>
    %205 = vector.broadcast %185 : vector<1x32xf32> to vector<16x32xf32>
    %206 = arith.mulf %204, %205 : vector<16x32xf32>
    %207 = vector.broadcast %186 : vector<1x32xf32> to vector<16x32xf32>
    %208 = arith.addf %206, %207 : vector<16x32xf32>
    %c1 = arith.constant 1 : index
    %c0_65 = arith.constant 0 : index
    %c0_66 = arith.constant 0 : index
    %209 = vector.load %arg3[%c1, %c0_65, %c0_66] : memref<2x32x96xf32, #tpu.memory_space<vmem>>, vector<1x32x96xf32>
    %210 = vector.shape_cast %209 : vector<1x32x96xf32> to vector<32x96xf32>
    %cst_67 = arith.constant dense<0.000000e+00> : vector<16x96xf32>
    %211 = tpu.matmul %208, %210, %cst_67 {dimension_numbers = #tpu.dot_dimension_numbers<[1], [0], [0], [1], [0, 0, 1, 1], [], []>} : vector<16x32xf32>, vector<32x96xf32>, vector<16x96xf32> -> vector<16x96xf32>
    %212 = vector.extract_strided_slice %1 {offsets = [12, 0], sizes = [1, 96], strides = [1, 1]} : vector<24x128xf32> to vector<1x96xf32>
    %213 = vector.broadcast %212 : vector<1x96xf32> to vector<16x96xf32>
    %214 = arith.addf %211, %213 : vector<16x96xf32>
    %215 = vector.extract_strided_slice %214 {offsets = [0, 32], sizes = [16, 64], strides = [1, 1]} : vector<16x96xf32> to vector<16x64xf32>
    %216 = vector.extract_strided_slice %214 {offsets = [0, 0], sizes = [8, 16], strides = [1, 1]} : vector<16x96xf32> to vector<8x16xf32>
    %217 = vector.extract_strided_slice %214 {offsets = [0, 32], sizes = [8, 16], strides = [1, 1]} : vector<16x96xf32> to vector<8x16xf32>
    %218 = vector.extract_strided_slice %214 {offsets = [0, 64], sizes = [8, 16], strides = [1, 1]} : vector<16x96xf32> to vector<8x16xf32>
    %cst_68 = arith.constant dense<0.000000e+00> : vector<8x8xf32>
    %219 = tpu.matmul %216, %217, %cst_68 {dimension_numbers = #tpu.dot_dimension_numbers<[1], [1], [0], [0], [0, 0, 1, 0], [], []>} : vector<8x16xf32>, vector<8x16xf32>, vector<8x8xf32> -> vector<8x8xf32>
    %cst_69 = arith.constant 2.500000e-01 : f32
    %220 = vector.broadcast %cst_69 : f32 to vector<8x8xf32>
    %221 = arith.mulf %219, %220 : vector<8x8xf32>
    %222 = arith.addf %221, %13 : vector<8x8xf32>
    %cst_70 = arith.constant dense<0xFF800000> : vector<8xf32>
    %223 = vector.multi_reduction <maximumf>, %222, %cst_70 [1] : vector<8x8xf32> to vector<8xf32>
    %224 = vector.shape_cast %223 : vector<8xf32> to vector<8x1xf32>
    %225 = vector.broadcast %224 : vector<8x1xf32> to vector<8x8xf32>
    %226 = arith.subf %222, %225 : vector<8x8xf32>
    %227 = math.exp %226 : vector<8x8xf32>
    %cst_71 = arith.constant dense<0.000000e+00> : vector<8xf32>
    %228 = vector.multi_reduction <add>, %227, %cst_71 [1] : vector<8x8xf32> to vector<8xf32>
    %229 = vector.shape_cast %228 : vector<8xf32> to vector<8x1xf32>
    %230 = tpu.reciprocal %229 {approx = true} : vector<8x1xf32> -> vector<8x1xf32>
    %231 = vector.broadcast %230 : vector<8x1xf32> to vector<8x8xf32>
    %232 = arith.mulf %227, %231 : vector<8x8xf32>
    %cst_72 = arith.constant dense<0.000000e+00> : vector<8x16xf32>
    %233 = tpu.matmul %232, %218, %cst_72 {dimension_numbers = #tpu.dot_dimension_numbers<[1], [0], [0], [1], [0, 0, 1, 1], [], []>} : vector<8x8xf32>, vector<8x16xf32>, vector<8x16xf32> -> vector<8x16xf32>
    %234 = vector.extract_strided_slice %214 {offsets = [0, 16], sizes = [8, 16], strides = [1, 1]} : vector<16x96xf32> to vector<8x16xf32>
    %235 = vector.extract_strided_slice %214 {offsets = [0, 48], sizes = [8, 16], strides = [1, 1]} : vector<16x96xf32> to vector<8x16xf32>
    %236 = vector.extract_strided_slice %214 {offsets = [0, 80], sizes = [8, 16], strides = [1, 1]} : vector<16x96xf32> to vector<8x16xf32>
    %cst_73 = arith.constant dense<0.000000e+00> : vector<8x8xf32>
    %237 = tpu.matmul %234, %235, %cst_73 {dimension_numbers = #tpu.dot_dimension_numbers<[1], [1], [0], [0], [0, 0, 1, 0], [], []>} : vector<8x16xf32>, vector<8x16xf32>, vector<8x8xf32> -> vector<8x8xf32>
    %cst_74 = arith.constant 2.500000e-01 : f32
    %238 = vector.broadcast %cst_74 : f32 to vector<8x8xf32>
    %239 = arith.mulf %237, %238 : vector<8x8xf32>
    %240 = arith.addf %239, %13 : vector<8x8xf32>
    %cst_75 = arith.constant dense<0xFF800000> : vector<8xf32>
    %241 = vector.multi_reduction <maximumf>, %240, %cst_75 [1] : vector<8x8xf32> to vector<8xf32>
    %242 = vector.shape_cast %241 : vector<8xf32> to vector<8x1xf32>
    %243 = vector.broadcast %242 : vector<8x1xf32> to vector<8x8xf32>
    %244 = arith.subf %240, %243 : vector<8x8xf32>
    %245 = math.exp %244 : vector<8x8xf32>
    %cst_76 = arith.constant dense<0.000000e+00> : vector<8xf32>
    %246 = vector.multi_reduction <add>, %245, %cst_76 [1] : vector<8x8xf32> to vector<8xf32>
    %247 = vector.shape_cast %246 : vector<8xf32> to vector<8x1xf32>
    %248 = tpu.reciprocal %247 {approx = true} : vector<8x1xf32> -> vector<8x1xf32>
    %249 = vector.broadcast %248 : vector<8x1xf32> to vector<8x8xf32>
    %250 = arith.mulf %245, %249 : vector<8x8xf32>
    %cst_77 = arith.constant dense<0.000000e+00> : vector<8x16xf32>
    %251 = tpu.matmul %250, %236, %cst_77 {dimension_numbers = #tpu.dot_dimension_numbers<[1], [0], [0], [1], [0, 0, 1, 1], [], []>} : vector<8x8xf32>, vector<8x16xf32>, vector<8x16xf32> -> vector<8x16xf32>
    %252 = tpu.concatenate %233, %251 in 1 : vector<8x16xf32>, vector<8x16xf32> -> vector<8x32xf32>
    %253 = vector.extract_strided_slice %214 {offsets = [8, 0], sizes = [8, 16], strides = [1, 1]} : vector<16x96xf32> to vector<8x16xf32>
    %254 = vector.extract_strided_slice %214 {offsets = [8, 32], sizes = [8, 16], strides = [1, 1]} : vector<16x96xf32> to vector<8x16xf32>
    %255 = vector.extract_strided_slice %214 {offsets = [8, 64], sizes = [8, 16], strides = [1, 1]} : vector<16x96xf32> to vector<8x16xf32>
    %cst_78 = arith.constant dense<0.000000e+00> : vector<8x8xf32>
    %256 = tpu.matmul %253, %254, %cst_78 {dimension_numbers = #tpu.dot_dimension_numbers<[1], [1], [0], [0], [0, 0, 1, 0], [], []>} : vector<8x16xf32>, vector<8x16xf32>, vector<8x8xf32> -> vector<8x8xf32>
    %cst_79 = arith.constant 2.500000e-01 : f32
    %257 = vector.broadcast %cst_79 : f32 to vector<8x8xf32>
    %258 = arith.mulf %256, %257 : vector<8x8xf32>
    %259 = arith.addf %258, %21 : vector<8x8xf32>
    %cst_80 = arith.constant dense<0xFF800000> : vector<8xf32>
    %260 = vector.multi_reduction <maximumf>, %259, %cst_80 [1] : vector<8x8xf32> to vector<8xf32>
    %261 = vector.shape_cast %260 : vector<8xf32> to vector<8x1xf32>
    %262 = vector.broadcast %261 : vector<8x1xf32> to vector<8x8xf32>
    %263 = arith.subf %259, %262 : vector<8x8xf32>
    %264 = math.exp %263 : vector<8x8xf32>
    %cst_81 = arith.constant dense<0.000000e+00> : vector<8xf32>
    %265 = vector.multi_reduction <add>, %264, %cst_81 [1] : vector<8x8xf32> to vector<8xf32>
    %266 = vector.shape_cast %265 : vector<8xf32> to vector<8x1xf32>
    %267 = tpu.reciprocal %266 {approx = true} : vector<8x1xf32> -> vector<8x1xf32>
    %268 = vector.broadcast %267 : vector<8x1xf32> to vector<8x8xf32>
    %269 = arith.mulf %264, %268 : vector<8x8xf32>
    %cst_82 = arith.constant dense<0.000000e+00> : vector<8x16xf32>
    %270 = tpu.matmul %269, %255, %cst_82 {dimension_numbers = #tpu.dot_dimension_numbers<[1], [0], [0], [1], [0, 0, 1, 1], [], []>} : vector<8x8xf32>, vector<8x16xf32>, vector<8x16xf32> -> vector<8x16xf32>
    %271 = vector.extract_strided_slice %214 {offsets = [8, 16], sizes = [8, 16], strides = [1, 1]} : vector<16x96xf32> to vector<8x16xf32>
    %272 = vector.extract_strided_slice %214 {offsets = [8, 48], sizes = [8, 16], strides = [1, 1]} : vector<16x96xf32> to vector<8x16xf32>
    %273 = vector.extract_strided_slice %214 {offsets = [8, 80], sizes = [8, 16], strides = [1, 1]} : vector<16x96xf32> to vector<8x16xf32>
    %cst_83 = arith.constant dense<0.000000e+00> : vector<8x8xf32>
    %274 = tpu.matmul %271, %272, %cst_83 {dimension_numbers = #tpu.dot_dimension_numbers<[1], [1], [0], [0], [0, 0, 1, 0], [], []>} : vector<8x16xf32>, vector<8x16xf32>, vector<8x8xf32> -> vector<8x8xf32>
    %cst_84 = arith.constant 2.500000e-01 : f32
    %275 = vector.broadcast %cst_84 : f32 to vector<8x8xf32>
    %276 = arith.mulf %274, %275 : vector<8x8xf32>
    %277 = arith.addf %276, %21 : vector<8x8xf32>
    %cst_85 = arith.constant dense<0xFF800000> : vector<8xf32>
    %278 = vector.multi_reduction <maximumf>, %277, %cst_85 [1] : vector<8x8xf32> to vector<8xf32>
    %279 = vector.shape_cast %278 : vector<8xf32> to vector<8x1xf32>
    %280 = vector.broadcast %279 : vector<8x1xf32> to vector<8x8xf32>
    %281 = arith.subf %277, %280 : vector<8x8xf32>
    %282 = math.exp %281 : vector<8x8xf32>
    %cst_86 = arith.constant dense<0.000000e+00> : vector<8xf32>
    %283 = vector.multi_reduction <add>, %282, %cst_86 [1] : vector<8x8xf32> to vector<8xf32>
    %284 = vector.shape_cast %283 : vector<8xf32> to vector<8x1xf32>
    %285 = tpu.reciprocal %284 {approx = true} : vector<8x1xf32> -> vector<8x1xf32>
    %286 = vector.broadcast %285 : vector<8x1xf32> to vector<8x8xf32>
    %287 = arith.mulf %282, %286 : vector<8x8xf32>
    %cst_87 = arith.constant dense<0.000000e+00> : vector<8x16xf32>
    %288 = tpu.matmul %287, %273, %cst_87 {dimension_numbers = #tpu.dot_dimension_numbers<[1], [0], [0], [1], [0, 0, 1, 1], [], []>} : vector<8x8xf32>, vector<8x16xf32>, vector<8x16xf32> -> vector<8x16xf32>
    %289 = tpu.concatenate %270, %288 in 1 : vector<8x16xf32>, vector<8x16xf32> -> vector<8x32xf32>
    %290 = tpu.concatenate %252, %289 in 0 : vector<8x32xf32>, vector<8x32xf32> -> vector<16x32xf32>
    %c1_88 = arith.constant 1 : index
    %c0_89 = arith.constant 0 : index
    %c0_90 = arith.constant 0 : index
    %291 = vector.load %arg4[%c1_88, %c0_89, %c0_90] : memref<2x32x32xf32, #tpu.memory_space<vmem>>, vector<1x32x32xf32>
    %292 = vector.shape_cast %291 : vector<1x32x32xf32> to vector<32x32xf32>
    %cst_91 = arith.constant dense<0.000000e+00> : vector<16x32xf32>
    %293 = tpu.matmul %290, %292, %cst_91 {dimension_numbers = #tpu.dot_dimension_numbers<[1], [0], [0], [1], [0, 0, 1, 1], [], []>} : vector<16x32xf32>, vector<32x32xf32>, vector<16x32xf32> -> vector<16x32xf32>
    %294 = arith.addf %184, %293 : vector<16x32xf32>
    %295 = vector.extract_strided_slice %1 {offsets = [13, 0], sizes = [1, 32], strides = [1, 1]} : vector<24x128xf32> to vector<1x32xf32>
    %296 = vector.broadcast %295 : vector<1x32xf32> to vector<16x32xf32>
    %297 = arith.addf %294, %296 : vector<16x32xf32>
    %298 = vector.extract_strided_slice %1 {offsets = [10, 0], sizes = [1, 32], strides = [1, 1]} : vector<24x128xf32> to vector<1x32xf32>
    %299 = vector.extract_strided_slice %1 {offsets = [11, 0], sizes = [1, 32], strides = [1, 1]} : vector<24x128xf32> to vector<1x32xf32>
    %cst_92 = arith.constant dense<0.000000e+00> : vector<16xf32>
    %300 = vector.multi_reduction <add>, %297, %cst_92 [1] : vector<16x32xf32> to vector<16xf32>
    %301 = vector.shape_cast %300 : vector<16xf32> to vector<16x1xf32>
    %cst_93 = arith.constant 3.200000e+01 : f32
    %302 = vector.broadcast %cst_93 : f32 to vector<16x1xf32>
    %303 = arith.divf %301, %302 : vector<16x1xf32>
    %304 = vector.broadcast %303 : vector<16x1xf32> to vector<16x32xf32>
    %305 = arith.subf %297, %304 : vector<16x32xf32>
    %306 = arith.mulf %305, %305 : vector<16x32xf32>
    %cst_94 = arith.constant dense<0.000000e+00> : vector<16xf32>
    %307 = vector.multi_reduction <add>, %306, %cst_94 [1] : vector<16x32xf32> to vector<16xf32>
    %308 = vector.shape_cast %307 : vector<16xf32> to vector<16x1xf32>
    %cst_95 = arith.constant 3.200000e+01 : f32
    %309 = vector.broadcast %cst_95 : f32 to vector<16x1xf32>
    %310 = arith.divf %308, %309 : vector<16x1xf32>
    %311 = vector.broadcast %303 : vector<16x1xf32> to vector<16x32xf32>
    %312 = arith.subf %297, %311 : vector<16x32xf32>
    %cst_96 = arith.constant 9.99999974E-6 : f32
    %313 = vector.broadcast %cst_96 : f32 to vector<16x1xf32>
    %314 = arith.addf %310, %313 : vector<16x1xf32>
    %315 = math.rsqrt %314 : vector<16x1xf32>
    %316 = vector.broadcast %315 : vector<16x1xf32> to vector<16x32xf32>
    %317 = arith.mulf %312, %316 : vector<16x32xf32>
    %318 = vector.broadcast %298 : vector<1x32xf32> to vector<16x32xf32>
    %319 = arith.mulf %317, %318 : vector<16x32xf32>
    %320 = vector.broadcast %299 : vector<1x32xf32> to vector<16x32xf32>
    %321 = arith.addf %319, %320 : vector<16x32xf32>
    %c1_97 = arith.constant 1 : index
    %c0_98 = arith.constant 0 : index
    %c0_99 = arith.constant 0 : index
    %322 = vector.load %arg5[%c1_97, %c0_98, %c0_99] : memref<2x32x128xf32, #tpu.memory_space<vmem>>, vector<1x32x128xf32>
    %323 = vector.shape_cast %322 : vector<1x32x128xf32> to vector<32x128xf32>
    %cst_100 = arith.constant dense<0.000000e+00> : vector<16x128xf32>
    %324 = tpu.matmul %321, %323, %cst_100 {dimension_numbers = #tpu.dot_dimension_numbers<[1], [0], [0], [1], [0, 0, 1, 1], [], []>} : vector<16x32xf32>, vector<32x128xf32>, vector<16x128xf32> -> vector<16x128xf32>
    %325 = vector.extract_strided_slice %1 {offsets = [14, 0], sizes = [1, 128], strides = [1, 1]} : vector<24x128xf32> to vector<1x128xf32>
    %326 = vector.broadcast %325 : vector<1x128xf32> to vector<16x128xf32>
    %327 = arith.addf %324, %326 : vector<16x128xf32>
    %328 = arith.mulf %327, %327 : vector<16x128xf32>
    %329 = arith.mulf %327, %328 : vector<16x128xf32>
    %cst_101 = arith.constant 4.471500e-02 : f32
    %330 = vector.broadcast %cst_101 : f32 to vector<16x128xf32>
    %331 = arith.mulf %330, %329 : vector<16x128xf32>
    %332 = arith.addf %327, %331 : vector<16x128xf32>
    %cst_102 = arith.constant 0.797884583 : f32
    %333 = vector.broadcast %cst_102 : f32 to vector<16x128xf32>
    %334 = arith.mulf %333, %332 : vector<16x128xf32>
    %335 = math.tanh %334 : vector<16x128xf32>
    %cst_103 = arith.constant 1.000000e+00 : f32
    %336 = vector.broadcast %cst_103 : f32 to vector<16x128xf32>
    %337 = arith.addf %336, %335 : vector<16x128xf32>
    %cst_104 = arith.constant 5.000000e-01 : f32
    %338 = vector.broadcast %cst_104 : f32 to vector<16x128xf32>
    %339 = arith.mulf %338, %337 : vector<16x128xf32>
    %340 = arith.mulf %327, %339 : vector<16x128xf32>
    %c1_105 = arith.constant 1 : index
    %c0_106 = arith.constant 0 : index
    %c0_107 = arith.constant 0 : index
    %341 = vector.load %arg6[%c1_105, %c0_106, %c0_107] : memref<2x128x32xf32, #tpu.memory_space<vmem>>, vector<1x128x32xf32>
    %342 = vector.shape_cast %341 : vector<1x128x32xf32> to vector<128x32xf32>
    %cst_108 = arith.constant dense<0.000000e+00> : vector<16x32xf32>
    %343 = tpu.matmul %340, %342, %cst_108 {dimension_numbers = #tpu.dot_dimension_numbers<[1], [0], [0], [1], [0, 0, 1, 1], [], []>} : vector<16x128xf32>, vector<128x32xf32>, vector<16x32xf32> -> vector<16x32xf32>
    %344 = arith.addf %297, %343 : vector<16x32xf32>
    %345 = vector.extract_strided_slice %1 {offsets = [15, 0], sizes = [1, 32], strides = [1, 1]} : vector<24x128xf32> to vector<1x32xf32>
    %346 = vector.broadcast %345 : vector<1x32xf32> to vector<16x32xf32>
    %347 = arith.addf %344, %346 : vector<16x32xf32>
    %348 = tpu.concatenate %52, %215 in 1 : vector<16x64xf32>, vector<16x64xf32> -> vector<16x128xf32>
    %c0_109 = arith.constant 0 : index
    %c0_110 = arith.constant 0 : index
    %349 = vector.load %arg9[%c0_109, %c0_110] : memref<16x128xf32, #tpu.memory_space<vmem>>, vector<16x128xf32>
    tpu.vector_store %arg9[%c0_109, %c0_110], %348 {strides = array<i32>} : memref<16x128xf32, #tpu.memory_space<vmem>>, vector<16x128xf32>,
    %350 = vector.extract_strided_slice %1 {offsets = [16, 0], sizes = [1, 32], strides = [1, 1]} : vector<24x128xf32> to vector<1x32xf32>
    %351 = vector.extract_strided_slice %1 {offsets = [17, 0], sizes = [1, 32], strides = [1, 1]} : vector<24x128xf32> to vector<1x32xf32>
    %cst_111 = arith.constant dense<0.000000e+00> : vector<16xf32>
    %352 = vector.multi_reduction <add>, %347, %cst_111 [1] : vector<16x32xf32> to vector<16xf32>
    %353 = vector.shape_cast %352 : vector<16xf32> to vector<16x1xf32>
    %cst_112 = arith.constant 3.200000e+01 : f32
    %354 = vector.broadcast %cst_112 : f32 to vector<16x1xf32>
    %355 = arith.divf %353, %354 : vector<16x1xf32>
    %356 = vector.broadcast %355 : vector<16x1xf32> to vector<16x32xf32>
    %357 = arith.subf %347, %356 : vector<16x32xf32>
    %358 = arith.mulf %357, %357 : vector<16x32xf32>
    %cst_113 = arith.constant dense<0.000000e+00> : vector<16xf32>
    %359 = vector.multi_reduction <add>, %358, %cst_113 [1] : vector<16x32xf32> to vector<16xf32>
    %360 = vector.shape_cast %359 : vector<16xf32> to vector<16x1xf32>
    %cst_114 = arith.constant 3.200000e+01 : f32
    %361 = vector.broadcast %cst_114 : f32 to vector<16x1xf32>
    %362 = arith.divf %360, %361 : vector<16x1xf32>
    %363 = vector.broadcast %355 : vector<16x1xf32> to vector<16x32xf32>
    %364 = arith.subf %347, %363 : vector<16x32xf32>
    %cst_115 = arith.constant 9.99999974E-6 : f32
    %365 = vector.broadcast %cst_115 : f32 to vector<16x1xf32>
    %366 = arith.addf %362, %365 : vector<16x1xf32>
    %367 = math.rsqrt %366 : vector<16x1xf32>
    %368 = vector.broadcast %367 : vector<16x1xf32> to vector<16x32xf32>
    %369 = arith.mulf %364, %368 : vector<16x32xf32>
    %370 = vector.broadcast %350 : vector<1x32xf32> to vector<16x32xf32>
    %371 = arith.mulf %369, %370 : vector<16x32xf32>
    %372 = vector.broadcast %351 : vector<1x32xf32> to vector<16x32xf32>
    %373 = arith.addf %371, %372 : vector<16x32xf32>
    %c0_116 = arith.constant 0 : index
    %c0_117 = arith.constant 0 : index
    %374 = vector.load %arg7[%c0_116, %c0_117] : memref<128x32xf32, #tpu.memory_space<vmem>>, vector<128x32xf32>
    %cst_118 = arith.constant dense<0.000000e+00> : vector<16x128xf32>
    %375 = tpu.matmul %373, %374, %cst_118 {dimension_numbers = #tpu.dot_dimension_numbers<[1], [1], [0], [0], [0, 0, 1, 0], [], []>} : vector<16x32xf32>, vector<128x32xf32>, vector<16x128xf32> -> vector<16x128xf32>
    %c0_119 = arith.constant 0 : index
    %c0_120 = arith.constant 0 : index
    %376 = vector.load %arg8[%c0_119, %c0_120] : memref<16x128xf32, #tpu.memory_space<vmem>>, vector<16x128xf32>
    tpu.vector_store %arg8[%c0_119, %c0_120], %375 {strides = array<i32>} : memref<16x128xf32, #tpu.memory_space<vmem>>, vector<16x128xf32>,
    return
  }
}

</mosaic_0001>

<bundles_post_ra>
// kernel: positional_adaptor_forward.1
= control target key start
LH: loop header
LB: loop body
LE: loop exit
PB: predicated region body
PF: predicated region fallthrough
CT: control target
= control target key end

     0   :  { %vm58_vm0 = vcmask 261120   ;;  %v37_v22 = vlaneseq  ;;  %v3238_v41 = vmov 0.0   ;;  %vm3239_vm1 = vmmov 0   ;;  %s3240_s22 = smov 80   ;;  %s3241_s23 = smov 96   ;;  %s3900_s0 = inlined_call_operand.vmem [shape: f32[16,32], index: 0, kind: input, shape index: {}]   ;;  %s3901_s3 = inlined_call_operand.vmem [shape: f32[2,32,96], index: 3, kind: input, shape index: {}]   ;;  %s3902_s2 = inlined_call_operand.vmem [shape: f32[24,128], index: 2, kind: input, shape index: {}]   ;;  %s3903_s1 = inlined_call_operand.vmem [shape: f32[2,8], index: 1, kind: input, shape index: {}]   ;;  %s3904_s4 = inlined_call_operand.vmem [shape: f32[2,32,32], index: 4, kind: input, shape index: {}]   ;;  %s3905_s5 = inlined_call_operand.vmem [shape: f32[2,32,128], index: 5, kind: input, shape index: {}]   ;;  %s3906_s6 = inlined_call_operand.vmem [shape: f32[2,128,32], index: 6, kind: input, shape index: {}]   ;;  %s3907_s7 = inlined_call_operand.vmem [shape: f32[128,32], index: 7, kind: input, shape index: {}]   ;;  %s3908_s9 = inlined_call_operand.vmem [shape: f32[16,128], index: 9, kind: output, shape index: {1}]   ;;  %s3909_s8 = inlined_call_operand.vmem [shape: f32[16,128], index: 8, kind: output, shape index: {0}]  }
   0x1   :  { %v3302_v0 = vld [vmem:[%s3900_s0] sm:$0xff]  ;;  %v3307_v1 = vld [vmem:[%s3900_s0 + $0x8] sm:$0xff]  ;;  %v100_v16 = vld [vmem:[%s3901_s3 + $0x10] sm:$0xff]  ;;  %2767 = vmatprep.subr.mxu1 %v3238_v41  ;;  %2769 = vmatprep.mubr.msk.f32.mxu1 %vm3239_vm1, %v3238_v41  ;;  %s3242_s24 = smov 112   ;;  %vm190_vm2 = vcmask 130048   ;;  %v3243_v55 = vmov 0  }
   0x2   :  { %v59_v2 = vsel %vm58_vm0, %v3302_v0, 0.0  ;;  %v62_v3 = vsel %vm58_vm0, %v3307_v1, 0.0  ;;  %v98_v14 = vld [vmem:[%s3901_s3] sm:$0xff]  ;;  %v99_v15 = vld [vmem:[%s3901_s3 + $0x8] sm:$0xff]  ;;  %v101_v18 = vld [vmem:[%s3901_s3 + $0x18] sm:$0xff]  ;;  %v3330_v26 = vshrl.u32 %v37_v22, 7 }
   0x3   :  { %60 = vadd.xlane.f32.xlu0 %v59_v2  ;;  %v3007_v17 = vpack.c.bf16 %v99_v15, %v98_v14  ;;  %v3011_v19 = vpack.c.bf16 %v101_v18, %v100_v16  ;;  %v3338_v29 = vld [vmem:[%s3902_s2] sm:$0xff]  ;;  %v40_v57 = vand.u32 127, %v37_v22  ;;  %v3244_v61 = vmov -1e+09   ;;  %s3246_s27 = smov 64   ;;  %s3247_s14 = smov 16   ;;  %vm3791_vm10 = vmpackc.low %vm58_vm0, %vm58_vm0 }
   0x4   :  { %v3333_v28 = vsub.s32 0, %v3330_v26  ;;  %v3341_v30 = vsub.s32 1, %v3330_v26  ;;  %v104_v42 = vsub.s32 4, %v3330_v26  ;;  %v36_v54 = vld [vmem:[%s3903_s1] sm:$0x3]  ;;  %vm267_vm7 = vcmask 64512  }
   0x5   :  { %3008 = vmatprep.subr.bf16.mxu0 %v3007_v17  ;;  %vm42_vm3 = vcmp.gt.f32.partialorder %v36_v54, 0.5  ;;  %vm41_vm4 = vcmp.le.s32.totalorder %v40_v57, %v3330_v26  ;;  %s3245_s1 = smov 48   ;;  %s3248_s28 = smov 32   ;;  %vm2354_vm11 = vcmask 523264  }
   0x6   :  { %3010 = vmatpush3.bf16.msra.mxu0 %v3007_v17  ;;  %v89_v31 = vrot.slane %v3338_v29, %v3333_v28  ;;  %v95_v34 = vrot.slane %v3338_v29, %v3341_v30  ;;  %v105_v43 = vrot.slane %v3338_v29, %v104_v42  ;;  %v43_v56 = vsel %vm42_vm3, 1, %v3243_v55 }
   0x7   :  { %63 = vadd.xlane.f32.xlu0 %v62_v3  ;;  %3012 = vmatprep.subr.bf16.mxu0 %v3011_v19  ;;  %v47_v58 = vrot.slane %v43_v56, %v3333_v28  ;;  %v54_v59 = vrot.slane %v43_v56, %v3341_v30 }
   0x9   :  { %vm48_vm5 = vcmp.eq.s32.totalorder %v47_v58, 1  ;;  %vm55_vm8 = vcmp.eq.s32.totalorder %v54_v59, 1 }
   0xa   :  { %3014 = vmatpush3.bf16.msra.mxu0 %v3011_v19  ;;  %vm49_vm6 = vmand %vm41_vm4, %vm48_vm5 }
   0xb   :  { %2777 = vmatprep.subr.mxu0 %v3238_v41  ;;  %v3409_v62 = vsel %vm49_vm6, 0.0, %v3244_v61  ;;  %vm56_vm9 = vmand %vm41_vm4, %vm55_vm8 }
  0x90   :  { %v61_v4 = vpop.xlane.xlu0 %60 }
  0x91   :  { %v66_v5 = vmul.f32 0.03125, %v61_v4 }
  0x93   :  { %v68_v6 = vsub.f32 %v3302_v0, %v66_v5 }
  0x94   :  { %v64_v7 = vpop.xlane.xlu0 %63 }
  0x95   :  { %v67_v8 = vmul.f32 0.03125, %v64_v7  ;;  %v70_v9 = vmul.f32 %v68_v6, %v68_v6 }
  0x97   :  { %v69_v10 = vsub.f32 %v3307_v1, %v67_v8  ;;  %v72_v11 = vsel %vm58_vm0, %v70_v9, 0.0 }
  0x98   :  { %73 = vadd.xlane.f32.xlu1 %v72_v11  ;;  %v3417_v11 = vsel %vm56_vm9, 0.0, %v3244_v61 }
  0x99   :  { %v71_v12 = vmul.f32 %v69_v10, %v69_v10 }
  0x9b   :  { %v75_v13 = vsel %vm58_vm0, %v71_v12, 0.0 }
  0x9c   :  { %76 = vadd.xlane.f32.xlu1 %v75_v13 }
 0x125   :  { %v74_v20 = vpop.xlane.xlu1 %73 }
 0x126   :  { %v78_v21 = vmul.f32 0.03125, %v74_v20 }
 0x128   :  { %v80_v23 = vadd.f32 1e-05, %v78_v21 }
 0x129   :  { %v77_v24 = vpop.xlane.xlu1 %76 }
 0x12a   :  { %3178 = vrsqrt.f32 %v80_v23  ;;  %v79_v25 = vmul.f32 0.03125, %v77_v24 }
 0x12c   :  { %v81_v27 = vadd.f32 1e-05, %v79_v25 }
 0x12e   :  { %3180 = vrsqrt.f32 %v81_v27 }
 0x134   :  { %v3179_v32 = vpop.eup %3178 }
 0x135   :  { %v84_v33 = vmul.f32 %v3179_v32, %v68_v6 }
 0x137   :  { %v90_v35 = vmul.f32 %v89_v31, %v84_v33 }
 0x138   :  { %v3181_v36 = vpop.eup %3180 }
 0x139   :  { %v85_v37 = vmul.f32 %v3181_v36, %v69_v10  ;;  %v96_v38 = vadd.f32 %v95_v34, %v90_v35 }
 0x13b   :  { %v91_v39 = vmul.f32 %v89_v31, %v85_v37  ;;  %2764 = vmatprep.mubr.msk.f32.mxu0 %vm58_vm0, %v96_v38 }
 0x13d   :  { %v97_v40 = vadd.f32 %v95_v34, %v91_v39 }
 0x13f   :  { %2765 = vmatmul.mubr.msk.f32.vlgmr.msra.gmra.mrb[0].mxu0 %vm58_vm0, %v97_v40 }
 0x140   :  { %2779 = vmatprep.mubr.msk.f32.mxu0 %vm3239_vm1, %v3238_v41 }
 0x212   :  { %v2766_v44 = vpop.f32.mrb[0].mxu0 }
 0x213   :  { %v178_v45 = vpop.f32.mrb[1].mxu0  ;;  %v3365_v47 = vadd.f32 %v2766_v44, %v105_v43 }
 0x214   :  { %v3359_v46 = vadd.f32 %v178_v45, %v105_v43 }
 0x216   :  { %357 = vrot.lane.b32.xlu1 %v3359_v46, %s3240_s22  ;;  %188 = vrot.lane.b32.xlu0 %v3359_v46, %s3241_s23 }
 0x21a   :  { %355 = vrot.lane.b32.xlu1 %v3359_v46, %s3242_s24  ;;  %695 = vrot.lane.b32.xlu0 %v3365_v47, %s3240_s22 }
 0x21e   :  { %528 = vrot.lane.b32.xlu1 %v3365_v47, %s3241_s23 }
 0x222   :  { %693 = vrot.lane.b32.xlu1 %v3365_v47, %s3242_s24 }
 0x288   :  { %v358_v48 = vpop.permute.xlu1 %357  ;;  %v3375_v49 = vpop.permute.xlu0 %188 }
 0x289   :  { %2768 = vmatpush3.xpose.msk.msra.mxu1 %vm190_vm2, %v3375_v49  ;;  %2778 = vmatpush3.xpose.msk.msra.mxu0 %vm190_vm2, %v358_v48 }
 0x28a   :  { %2787 = vmatprep.subr.mxu0 %v3238_v41  ;;  %2772 = vmatprep.subr.mxu1 %v3238_v41 }
 0x28c   :  { %v356_v50 = vpop.permute.xlu1 %355  ;;  %2770 = vmatmul.mubr.msk.f32.vlgmr.msra.gmra.mrb[0].mxu1 %vm190_vm2, %v3359_v46  ;;  %v696_v52 = vpop.permute.xlu0 %695 }
 0x28d   :  { %2780 = vmatmul.mubr.msk.f32.vlgmr.msra.gmra.mrb[2].mxu0 %vm190_vm2, %v356_v50  ;;  %2774 = vmatprep.mubr.msk.f32.mxu1 %vm3239_vm1, %v3238_v41 }
 0x28e   :  { %2789 = vmatprep.mubr.msk.f32.mxu0 %vm3239_vm1, %v3238_v41 }
 0x290   :  { %v3389_v51 = vpop.permute.xlu1 %528 }
 0x291   :  { %2788 = vmatpush3.xpose.msk.msra.mxu0 %vm190_vm2, %v3389_v51 }
 0x292   :  { %2797 = vmatprep.subr.mxu0 %v3238_v41 }
 0x294   :  { %2790 = vmatmul.mubr.msk.f32.vlgmr.msra.gmra.mrb[4].mxu0 %vm190_vm2, %v3365_v47  ;;  %v694_v53 = vpop.permute.xlu1 %693 }
 0x295   :  { %2798 = vmatpush3.xpose.msk.msra.mxu0 %vm190_vm2, %v696_v52  ;;  %2799 = vmatprep.mubr.msk.f32.mxu0 %vm3239_vm1, %v3238_v41 }
 0x298   :  { %2800 = vmatmul.mubr.msk.f32.vlgmr.msra.gmra.mrb[6].mxu0 %vm190_vm2, %v694_v53 }
 0x35f   :  { %v261_v60 = vpop.f32.mrb[0].mxu1 }
 0x360   :  { %v265_v63 = vmul.f32 0.25, %v261_v60  ;;  %v2771_v2 = vpop.f32.mrb[1].mxu1  ;;  %v429_v3 = vpop.f32.mrb[2].mxu0 }
 0x361   :  { %v433_v4 = vmul.f32 0.25, %v429_v3  ;;  %v2781_v5 = vpop.f32.mrb[3].mxu0 }
 0x362   :  { %v266_v6 = vadd.f32 %v265_v63, %v3409_v62  ;;  %v866_v5 = vld [vmem:[%s3904_s4 + $0x8] sm:$0xff] }
 0x363   :  { %v434_v7 = vadd.f32 %v433_v4, %v3409_v62  ;;  %v865_v4 = vld [vmem:[%s3904_s4] sm:$0xff] }
 0x364   :  { %v268_v8 = vsel %vm267_vm7, %v266_v6, -inf }
 0x365   :  { %269 = vmax.xlane.f32.xlu0 %v268_v8  ;;  %v435_v9 = vsel %vm267_vm7, %v434_v7, -inf  ;;  %v868_v8 = vld [vmem:[%s3904_s4 + $0x18] sm:$0xff] }
 0x366   :  { %436 = vmax.xlane.f32.xlu1 %v435_v9 }
 0x367   :  { %v600_v10 = vpop.f32.mrb[4].mxu0 }
 0x368   :  { %v604_v12 = vmul.f32 0.25, %v600_v10  ;;  %v2791_v13 = vpop.f32.mrb[5].mxu0 }
 0x36a   :  { %v605_v14 = vadd.f32 %v604_v12, %v3417_v11 }
 0x36b   :  { %v767_v15 = vpop.f32.mrb[6].mxu0 }
 0x36c   :  { %v771_v16 = vmul.f32 0.25, %v767_v15  ;;  %v2801_v17 = vpop.f32.mrb[7].mxu0  ;;  %v606_v18 = vsel %vm267_vm7, %v605_v14, -inf }
 0x36d   :  { %607 = vmax.xlane.f32.xlu0 %v606_v18 }
 0x36e   :  { %v772_v19 = vadd.f32 %v771_v16, %v3417_v11 }
 0x370   :  { %v773_v20 = vsel %vm267_vm7, %v772_v19, -inf }
 0x371   :  { %774 = vmax.xlane.f32.xlu0 %v773_v20 }
 0x3f2   :  { %v270_v21 = vpop.xlane.xlu0 %269 }
 0x3f3   :  { %v271_v22 = vsub.f32 %v266_v6, %v270_v21  ;;  %v437_v23 = vpop.xlane.xlu1 %436  ;;  %v867_v6 = vld [vmem:[%s3904_s4 + $0x10] sm:$0xff] }
 0x3f4   :  { %v438_v24 = vsub.f32 %v434_v7, %v437_v23  ;;  %v3015_v7 = vpack.c.bf16 %v866_v5, %v865_v4  ;;  %v3019_v9 = vpack.c.bf16 %v868_v8, %v867_v6  ;;  %v954_v23 = vsub.s32 5, %v3330_v26 }
 0x3f5   :  { %v272_v25 = vmul.f32 1.442695, %v271_v22 }
 0x3f6   :  { %v439_v27 = vmul.f32 1.442695, %v438_v24  ;;  %3016 = vmatprep.subr.bf16.mxu0 %v3015_v7  ;;  %v955_v24 = vrot.slane %v3338_v29, %v954_v23 }
 0x3f7   :  { %3182 = vpow2.f32 %v272_v25  ;;  %3018 = vmatpush3.bf16.msra.mxu0 %v3015_v7 }
 0x3f8   :  { %3184 = vpow2.f32 %v439_v27  ;;  %3020 = vmatprep.subr.bf16.mxu0 %v3019_v9 }
 0x3fa   :  { %v608_v31 = vpop.xlane.xlu0 %607 }
 0x3fb   :  { %v609_v32 = vsub.f32 %v605_v14, %v608_v31  ;;  %3022 = vmatpush3.bf16.msra.mxu0 %v3019_v9 }
 0x3fd   :  { %v610_v33 = vmul.f32 1.442695, %v609_v32 }
 0x3fe   :  { %v775_v40 = vpop.xlane.xlu0 %774 }
 0x3ff   :  { %3186 = vpow2.f32 %v610_v33  ;;  %v776_v43 = vsub.f32 %v772_v19, %v775_v40 }
 0x401   :  { %v3183_v34 = vpop.eup %3182  ;;  %v777_v44 = vmul.f32 1.442695, %v776_v43 }
 0x402   :  { %v3185_v35 = vpop.eup %3184  ;;  %v274_v36 = vsel %vm267_vm7, %v3183_v34, 0.0 }
 0x403   :  { %275 = vadd.xlane.f32.xlu0 %v274_v36  ;;  %v441_v37 = vsel %vm267_vm7, %v3185_v35, 0.0  ;;  %3188 = vpow2.f32 %v777_v44 }
 0x404   :  { %442 = vadd.xlane.f32.xlu1 %v441_v37 }
 0x409   :  { %v3187_v38 = vpop.eup %3186 }
 0x40a   :  { %v612_v39 = vsel %vm267_vm7, %v3187_v38, 0.0 }
 0x40b   :  { %613 = vadd.xlane.f32.xlu0 %v612_v39 }
 0x40d   :  { %v3189_v45 = vpop.eup %3188 }
 0x40e   :  { %v779_v48 = vsel %vm267_vm7, %v3189_v45, 0.0 }
 0x415   :  { %446 = vrot.lane.b32.xlu1 %v3359_v46, %s3245_s1 }
 0x419   :  { %617 = vrot.lane.b32.xlu1 %v3365_v47, %s3246_s27 }
 0x421   :  { %279 = vrot.lane.b32.xlu0 %v3359_v46, %s3246_s27 }
 0x43d   :  { %780 = vadd.xlane.f32.xlu1 %v779_v48 }
 0x44e   :  { %784 = vrot.lane.b32.xlu1 %v3365_v47, %s3245_s1 }
 0x490   :  { %v276_v50 = vpop.xlane.xlu0 %275 }
 0x491   :  { %3190 = vrcp.f32 %v276_v50  ;;  %v443_v52 = vpop.xlane.xlu1 %442  ;;  %v996_v50 = vld [vmem:[%s3905_s5] sm:$0xff] }
 0x492   :  { %3192 = vrcp.f32 %v443_v52  ;;  %v997_v52 = vld [vmem:[%s3905_s5 + $0x8] sm:$0xff] }
 0x495   :  { %v447_v46 = vpop.permute.xlu1 %446 }
 0x498   :  { %v614_v53 = vpop.xlane.xlu0 %613 }
 0x499   :  { %3194 = vrcp.f32 %v614_v53  ;;  %v618_v58 = vpop.permute.xlu1 %617  ;;  %v3023_v53 = vpack.c.bf16 %v997_v52, %v996_v50 }
 0x49b   :  { %v3191_v54 = vpop.eup %3190  ;;  %3024 = vmatprep.subr.bf16.mxu0 %v3023_v53 }
 0x49c   :  { %v278_v55 = vmul.f32 %v3191_v54, %v3183_v34  ;;  %v280_v56 = vpop.permute.xlu0 %279  ;;  %v3193_v57 = vpop.eup %3192  ;;  %v998_v54 = vld [vmem:[%s3905_s5 + $0x10] sm:$0xff] }
 0x49d   :  { %2773 = vmatpush3.msra.mxu1 %v280_v56  ;;  %v445_v47 = vmul.f32 %v3193_v57, %v3185_v35 }
 0x49e   :  { %2775 = vmatmul.mubr.msk.f32.vlgmr.msra.gmra.mrb[2].mxu1 %vm267_vm7, %v278_v55  ;;  %2782 = vmatprep.subr.mxu1 %v3238_v41  ;;  %v999_v55 = vld [vmem:[%s3905_s5 + $0x18] sm:$0xff] }
 0x49f   :  { %2783 = vmatpush3.msra.mxu1 %v447_v46  ;;  %2784 = vmatprep.mubr.msk.f32.mxu1 %vm3239_vm1, %v3238_v41  ;;  %v3027_v46 = vpack.c.bf16 %v999_v55, %v998_v54 }
 0x4a0   :  { %2792 = vmatprep.subr.mxu1 %v3238_v41 }
 0x4a2   :  { %2785 = vmatmul.mubr.msk.f32.vlgmr.msra.gmra.mrb[4].mxu1 %vm267_vm7, %v445_v47 }
 0x4a3   :  { %v3195_v59 = vpop.eup %3194  ;;  %2793 = vmatpush3.msra.mxu1 %v618_v58  ;;  %2794 = vmatprep.mubr.msk.f32.mxu1 %vm3239_vm1, %v3238_v41 }
 0x4a4   :  { %v616_v60 = vmul.f32 %v3195_v59, %v3187_v38  ;;  %2802 = vmatprep.subr.mxu1 %v3238_v41 }
 0x4a6   :  { %2795 = vmatmul.mubr.msk.f32.vlgmr.msra.gmra.mrb[6].mxu1 %vm267_vm7, %v616_v60 }
 0x4a7   :  { %2804 = vmatprep.mubr.msk.f32.mxu1 %vm3239_vm1, %v3238_v41 }
 0x4ca   :  { %v781_v61 = vpop.xlane.xlu1 %780 }
 0x4cb   :  { %3196 = vrcp.f32 %v781_v61  ;;  %v986_v61 = vsub.s32 2, %v3330_v26 }
 0x4ce   :  { %v785_v63 = vpop.permute.xlu1 %784 }
 0x4cf   :  { %2803 = vmatpush3.msra.mxu1 %v785_v63  ;;  %v992_v63 = vsub.s32 3, %v3330_v26 }
 0x4d0   :  { %2875 = vmatprep.subr.mxu1 %v3238_v41 }
 0x4d1   :  { %v993_v5 = vrot.slane %v3338_v29, %v992_v63 }
 0x4d5   :  { %v3197_v2 = vpop.eup %3196 }
 0x4d6   :  { %v783_v3 = vmul.f32 %v3197_v2, %v3189_v45  ;;  %v987_v2 = vrot.slane %v3338_v29, %v986_v61 }
 0x4d8   :  { %2805 = vmatmul.mubr.msk.f32.vlgmr.msra.gmra.mrb[8].mxu1 %vm267_vm7, %v783_v3 }
 0x4d9   :  { %2877 = vmatprep.mubr.msk.f32.mxu1 %vm3239_vm1, %v3238_v41 }
 0x571   :  { %v351_v10 = vpop.f32.mrb[2].mxu1 }
 0x572   :  { %v2776_v12 = vpop.f32.mrb[3].mxu1 }
 0x575   :  { %v518_v13 = vpop.f32.mrb[4].mxu1 }
 0x576   :  { %523 = vrot.lane.b32.xlu0 %v518_v13, %s3247_s14  ;;  %v2786_v14 = vpop.f32.mrb[5].mxu1  ;;  %v1103_v13 = vld [vmem:[%s3906_s6] sm:$0xff] }
 0x577   :  { %v1104_v14 = vld [vmem:[%s3906_s6 + $0x8] sm:$0xff] }
 0x579   :  { %v689_v15 = vpop.f32.mrb[6].mxu1 }
 0x57a   :  { %v2796_v16 = vpop.f32.mrb[7].mxu1 }
 0x57b   :  { %v1105_v16 = vld [vmem:[%s3906_s6 + $0x10] sm:$0xff] }
 0x5ab   :  { %v856_v17 = vpop.f32.mrb[8].mxu1 }
 0x5ac   :  { %861 = vrot.lane.b32.xlu1 %v856_v17, %s3247_s14  ;;  %v2806_v18 = vpop.f32.mrb[9].mxu1  ;;  %v1106_v17 = vld [vmem:[%s3906_s6 + $0x18] sm:$0xff] }
 0x5ad   :  { %v3035_v18 = vpack.c.bf16 %v1106_v17, %v1105_v16 }
 0x5e8   :  { %v524_v19 = vpop.permute.xlu0 %523 }
 0x5e9   :  { %v526_v20 = vsel %vm190_vm2, %v351_v10, %v524_v19  ;;  %v1107_v19 = vld [vmem:[%s3906_s6 + $0x20] sm:$0xff] }
 0x5ea   :  { %2815 = vmatprep.mubr.msk.f32.mxu0 %vm58_vm0, %v526_v20  ;;  %v1108_v20 = vld [vmem:[%s3906_s6 + $0x28] sm:$0xff] }
 0x61e   :  { %v862_v21 = vpop.permute.xlu1 %861 }
 0x61f   :  { %v864_v22 = vsel %vm190_vm2, %v689_v15, %v862_v21  ;;  %v3031_v15 = vpack.c.bf16 %v1104_v14, %v1103_v13  ;;  %v3039_v21 = vpack.c.bf16 %v1108_v20, %v1107_v19 }
 0x620   :  { %2816 = vmatmul.mubr.msk.f32.vlgmr.msra.gmra.mrb[8].mxu0 %vm58_vm0, %v864_v22  ;;  %v1109_v22 = vld [vmem:[%s3906_s6 + $0x30] sm:$0xff] }
 0x621   :  { %3026 = vmatpush3.bf16.msra.mxu0 %v3023_v53 }
 0x622   :  { %3028 = vmatprep.subr.bf16.mxu0 %v3027_v46 }
 0x625   :  { %3030 = vmatpush3.bf16.msra.mxu0 %v3027_v46 }
 0x626   :  { %3032 = vmatprep.subr.bf16.mxu0 %v3031_v15 }
 0x6f3   :  { %v2817_v25 = vpop.f32.mrb[8].mxu0 }
 0x6f4   :  { %v951_v27 = vadd.f32 %v2817_v25, %v3307_v1  ;;  %v941_v31 = vpop.f32.mrb[9].mxu0 }
 0x6f5   :  { %v950_v32 = vadd.f32 %v941_v31, %v3302_v0  ;;  %v1112_v31 = vld [vmem:[%s3906_s6 + $0x48] sm:$0xff] }
 0x6f6   :  { %v3475_v33 = vadd.f32 %v955_v24, %v951_v27  ;;  %v1111_v27 = vld [vmem:[%s3906_s6 + $0x40] sm:$0xff] }
 0x6f7   :  { %v3477_v34 = vadd.f32 %v955_v24, %v950_v32  ;;  %v1110_v24 = vld [vmem:[%s3906_s6 + $0x38] sm:$0xff]  ;;  %v1113_v32 = vld [vmem:[%s3906_s6 + $0x50] sm:$0xff] }
 0x6f8   :  { %v961_v35 = vsel %vm58_vm0, %v3475_v33, 0.0  ;;  %v3043_v25 = vpack.c.bf16 %v1110_v24, %v1109_v22 }
 0x6f9   :  { %962 = vadd.xlane.f32.xlu1 %v961_v35  ;;  %v958_v36 = vsel %vm58_vm0, %v3477_v34, 0.0  ;;  %v3047_v35 = vpack.c.bf16 %v1112_v31, %v1111_v27 }
 0x6fa   :  { %959 = vadd.xlane.f32.xlu0 %v958_v36  ;;  %v1114_v36 = vld [vmem:[%s3906_s6 + $0x58] sm:$0xff] }
 0x786   :  { %v963_v37 = vpop.xlane.xlu1 %962 }
 0x787   :  { %v965_v38 = vmul.f32 0.03125, %v963_v37  ;;  %v960_v39 = vpop.xlane.xlu0 %959  ;;  %v3051_v37 = vpack.c.bf16 %v1114_v36, %v1113_v32  ;;  %v2570_v36 = vld [vmem:[%s3901_s3 + $0x20] sm:$0xff] }
 0x788   :  { %v964_v40 = vmul.f32 0.03125, %v960_v39  ;;  %v1116_v39 = vld [vmem:[%s3906_s6 + $0x68] sm:$0xff] }
 0x789   :  { %v967_v1 = vsub.f32 %v3475_v33, %v965_v38  ;;  %v1115_v38 = vld [vmem:[%s3906_s6 + $0x60] sm:$0xff] }
 0x78a   :  { %v966_v0 = vsub.f32 %v3477_v34, %v964_v40  ;;  %v3055_v40 = vpack.c.bf16 %v1116_v39, %v1115_v38  ;;  %v2572_v39 = vld [vmem:[%s3901_s3 + $0x30] sm:$0xff] }
 0x78b   :  { %v969_v45 = vmul.f32 %v967_v1, %v967_v1 }
 0x78c   :  { %v968_v43 = vmul.f32 %v966_v0, %v966_v0 }
 0x78d   :  { %v973_v48 = vsel %vm58_vm0, %v969_v45, 0.0 }
 0x78e   :  { %v970_v44 = vsel %vm58_vm0, %v968_v43, 0.0 }
 0x78f   :  { %971 = vadd.xlane.f32.xlu0 %v970_v44  ;;  %v1002_v44 = vsub.s32 6, %v3330_v26 }
 0x791   :  { %v1003_v45 = vrot.slane %v3338_v29, %v1002_v44 }
 0x793   :  { %974 = vadd.xlane.f32.xlu0 %v973_v48 }
 0x81c   :  { %v972_v56 = vpop.xlane.xlu0 %971 }
 0x81d   :  { %v976_v57 = vmul.f32 0.03125, %v972_v56 }
 0x81f   :  { %v978_v47 = vadd.f32 1e-05, %v976_v57 }
 0x820   :  { %v975_v58 = vpop.xlane.xlu0 %974 }
 0x821   :  { %3198 = vrsqrt.f32 %v978_v47  ;;  %v977_v59 = vmul.f32 0.03125, %v975_v58 }
 0x823   :  { %v979_v60 = vadd.f32 1e-05, %v977_v59 }
 0x825   :  { %3200 = vrsqrt.f32 %v979_v60 }
 0x82b   :  { %v3199_v3 = vpop.eup %3198 }
 0x82c   :  { %v982_v4 = vmul.f32 %v3199_v3, %v966_v0  ;;  %v1118_v0 = vld [vmem:[%s3906_s6 + $0x78] sm:$0xff] }
 0x82e   :  { %v988_v6 = vmul.f32 %v987_v2, %v982_v4 }
 0x82f   :  { %v3201_v7 = vpop.eup %3200 }
 0x830   :  { %v983_v8 = vmul.f32 %v3201_v7, %v967_v1  ;;  %v994_v9 = vadd.f32 %v993_v5, %v988_v6  ;;  %v1117_v1 = vld [vmem:[%s3906_s6 + $0x70] sm:$0xff] }
 0x831   :  { %v3059_v43 = vpack.c.bf16 %v1118_v0, %v1117_v1 }
 0x832   :  { %v989_v10 = vmul.f32 %v987_v2, %v983_v8  ;;  %2826 = vmatprep.mubr.msk.f32.mxu0 %vm58_vm0, %v994_v9 }
 0x834   :  { %v995_v12 = vadd.f32 %v993_v5, %v989_v10 }
 0x836   :  { %2827 = vmatmul.mubr.msk.f32.vlgmr.msra.gmra.mrb[10].mxu0 %vm58_vm0, %v995_v12  ;;  %v1198_v12 = vsub.s32 7, %v3330_v26 }
 0x837   :  { %3034 = vmatpush3.bf16.msra.mxu0 %v3031_v15 }
 0x838   :  { %3036 = vmatprep.subr.bf16.mxu0 %v3035_v18  ;;  %v1199_v13 = vrot.slane %v3338_v29, %v1198_v12 }
 0x83b   :  { %3038 = vmatpush3.bf16.msra.mxu0 %v3035_v18 }
 0x83c   :  { %3040 = vmatprep.subr.bf16.mxu0 %v3039_v21 }
 0x83f   :  { %3042 = vmatpush3.bf16.msra.mxu0 %v3039_v21 }
 0x840   :  { %3044 = vmatprep.subr.bf16.mxu0 %v3043_v25 }
 0x843   :  { %3046 = vmatpush3.bf16.msra.mxu0 %v3043_v25 }
 0x844   :  { %3048 = vmatprep.subr.bf16.mxu0 %v3047_v35 }
 0x847   :  { %3050 = vmatpush3.bf16.msra.mxu0 %v3047_v35 }
 0x848   :  { %3052 = vmatprep.subr.bf16.mxu0 %v3051_v37 }
 0x84b   :  { %3054 = vmatpush3.bf16.msra.mxu0 %v3051_v37  ;;  %v2571_v37 = vld [vmem:[%s3901_s3 + $0x28] sm:$0xff] }
 0x84c   :  { %3056 = vmatprep.subr.bf16.mxu0 %v3055_v40  ;;  %v3063_v38 = vpack.c.bf16 %v2571_v37, %v2570_v36 }
 0x84f   :  { %3058 = vmatpush3.bf16.msra.mxu0 %v3055_v40  ;;  %v2573_v40 = vld [vmem:[%s3901_s3 + $0x38] sm:$0xff] }
 0x850   :  { %3060 = vmatprep.subr.bf16.mxu0 %v3059_v43  ;;  %v3067_v1 = vpack.c.bf16 %v2573_v40, %v2572_v39 }
 0x853   :  { %3062 = vmatpush3.bf16.msra.mxu0 %v3059_v43 }
 0x854   :  { %3064 = vmatprep.subr.bf16.mxu0 %v3063_v38 }
 0x909   :  { %v2828_v48 = vpop.f32.mrb[10].mxu0 }
 0x90a   :  { %v1082_v50 = vadd.f32 %v2828_v48, %v1003_v45  ;;  %v1076_v52 = vpop.f32.mrb[11].mxu0 }
 0x90b   :  { %v1077_v53 = vadd.f32 %v1076_v52, %v1003_v45 }
 0x90c   :  { %v1086_v54 = vmul.f32 %v1082_v50, %v1082_v50 }
 0x90d   :  { %v1085_v55 = vmul.f32 %v1077_v53, %v1077_v53 }
 0x90e   :  { %v1088_v46 = vmul.f32 %v1086_v54, %v1082_v50 }
 0x90f   :  { %v1087_v56 = vmul.f32 %v1085_v55, %v1077_v53 }
 0x910   :  { %v1090_v57 = vmul.f32 0.044715, %v1088_v46 }
 0x911   :  { %v1089_v47 = vmul.f32 0.044715, %v1087_v56 }
 0x912   :  { %v1092_v58 = vadd.f32 %v1090_v57, %v1082_v50 }
 0x913   :  { %v1091_v59 = vadd.f32 %v1089_v47, %v1077_v53 }
 0x914   :  { %v1094_v60 = vmul.f32 0.7978846, %v1092_v58 }
 0x915   :  { %v1093_v2 = vmul.f32 0.7978846, %v1091_v59 }
 0x916   :  { %3202 = vtanh.f32 %v1094_v60 }
 0x917   :  { %3204 = vtanh.f32 %v1093_v2 }
 0x920   :  { %v3203_v3 = vpop.eup %3202 }
 0x921   :  { %v3205_v4 = vpop.eup %3204  ;;  %v1098_v5 = vadd.f32 1.0, %v3203_v3 }
 0x922   :  { %v1097_v6 = vadd.f32 1.0, %v3205_v4 }
 0x923   :  { %v1100_v7 = vmul.f32 0.5, %v1098_v5 }
 0x924   :  { %v1099_v8 = vmul.f32 0.5, %v1097_v6 }
 0x925   :  { %v1102_v10 = vmul.f32 %v1100_v7, %v1082_v50 }
 0x926   :  { %v1101_v9 = vmul.f32 %v1099_v8, %v1077_v53  ;;  %v3595_v53 = vld [vmem:[%s3902_s2 + $0x8] sm:$0xff] }
 0x927   :  { %v1231_v54 = vrot.slane %v3595_v53, %v3333_v28  ;;  %v1237_v47 = vrot.slane %v3595_v53, %v3341_v30  ;;  %v1248_v3 = vrot.slane %v3595_v53, %v104_v42 }
 0x928   :  { %2861 = vmatprep.mubr.f32.mxu0 %v1101_v9 }
 0x929   :  { %2862 = vmatmul.mubr.f32.vlgmr.msra.gmra.mrb[12].mxu0 %v1102_v10 }
 0x92a   :  { %3066 = vmatpush3.bf16.msra.mxu0 %v3063_v38 }
 0x92b   :  { %3068 = vmatprep.subr.bf16.mxu0 %v3067_v1 }
 0x92e   :  { %3070 = vmatpush3.bf16.msra.mxu0 %v3067_v1 }
 0x92f   :  { %2905 = vmatprep.subr.mxu0 %v3238_v41 }
 0x9fc   :  { %v2863_v14 = vpop.f32.mrb[12].mxu0 }
 0x9fd   :  { %v1195_v15 = vadd.f32 %v2863_v14, %v3475_v33  ;;  %v1185_v16 = vpop.f32.mrb[13].mxu0 }
 0x9fe   :  { %v1194_v17 = vadd.f32 %v1185_v16, %v3477_v34 }
 0x9ff   :  { %v3567_v18 = vadd.f32 %v1199_v13, %v1195_v15 }
 0xa00   :  { %v3569_v19 = vadd.f32 %v1199_v13, %v1194_v17 }
 0xa01   :  { %v1205_v20 = vsel %vm58_vm0, %v3567_v18, 0.0 }
 0xa02   :  { %1206 = vadd.xlane.f32.xlu1 %v1205_v20  ;;  %v1202_v21 = vsel %vm58_vm0, %v3569_v19, 0.0 }
 0xa03   :  { %1203 = vadd.xlane.f32.xlu0 %v1202_v21 }
 0xa8f   :  { %v1207_v22 = vpop.xlane.xlu1 %1206 }
 0xa90   :  { %v1209_v29 = vmul.f32 0.03125, %v1207_v22  ;;  %v1204_v24 = vpop.xlane.xlu0 %1203 }
 0xa91   :  { %v1208_v25 = vmul.f32 0.03125, %v1204_v24 }
 0xa92   :  { %v1211_v33 = vsub.f32 %v3567_v18, %v1209_v29 }
 0xa93   :  { %v1210_v34 = vsub.f32 %v3569_v19, %v1208_v25 }
 0xa94   :  { %v1213_v27 = vmul.f32 %v1211_v33, %v1211_v33 }
 0xa95   :  { %v1212_v31 = vmul.f32 %v1210_v34, %v1210_v34 }
 0xa96   :  { %v1217_v32 = vsel %vm58_vm0, %v1213_v27, 0.0 }
 0xa97   :  { %1218 = vadd.xlane.f32.xlu1 %v1217_v32  ;;  %v1214_v35 = vsel %vm58_vm0, %v1212_v31, 0.0 }
 0xa98   :  { %1215 = vadd.xlane.f32.xlu0 %v1214_v35 }
 0xb24   :  { %v1219_v0 = vpop.xlane.xlu1 %1218 }
 0xb25   :  { %v1221_v43 = vmul.f32 0.03125, %v1219_v0  ;;  %v1216_v45 = vpop.xlane.xlu0 %1215 }
 0xb26   :  { %v1220_v48 = vmul.f32 0.03125, %v1216_v45 }
 0xb27   :  { %v1223_v50 = vadd.f32 1e-05, %v1221_v43 }
 0xb28   :  { %v1222_v52 = vadd.f32 1e-05, %v1220_v48 }
 0xb29   :  { %3206 = vrsqrt.f32 %v1223_v50 }
 0xb2a   :  { %3208 = vrsqrt.f32 %v1222_v52 }
 0xb33   :  { %v3207_v55 = vpop.eup %3206 }
 0xb34   :  { %v3209_v46 = vpop.eup %3208  ;;  %v1227_v56 = vmul.f32 %v3207_v55, %v1211_v33 }
 0xb35   :  { %v1226_v57 = vmul.f32 %v3209_v46, %v1210_v34 }
 0xb36   :  { %v1233_v58 = vmul.f32 %v1231_v54, %v1227_v56 }
 0xb37   :  { %v1232_v59 = vmul.f32 %v1231_v54, %v1226_v57 }
 0xb38   :  { %v1239_v2 = vadd.f32 %v1237_v47, %v1233_v58 }
 0xb39   :  { %v1238_v60 = vadd.f32 %v1237_v47, %v1232_v59 }
 0xb3b   :  { %2872 = vmatprep.mubr.msk.f32.mxu0 %vm58_vm0, %v1238_v60 }
 0xb3c   :  { %2873 = vmatmul.mubr.msk.f32.vlgmr.msra.gmra.mrb[14].mxu0 %vm58_vm0, %v1239_v2 }
 0xb3d   :  { %2907 = vmatprep.mubr.msk.f32.mxu0 %vm3239_vm1, %v3238_v41 }
 0xc0f   :  { %v2874_v4 = vpop.f32.mrb[14].mxu0 }
 0xc10   :  { %v3608_v5 = vadd.f32 %v2874_v4, %v1248_v3  ;;  %v1321_v6 = vpop.f32.mrb[15].mxu0 }
 0xc11   :  { %v3610_v7 = vadd.f32 %v1321_v6, %v1248_v3 }
 0xc13   :  { %1331 = vrot.lane.b32.xlu0 %v3610_v7, %s3241_s23 }
 0xc17   :  { %1498 = vrot.lane.b32.xlu0 %v3610_v7, %s3240_s22 }
 0xc85   :  { %v1332_v8 = vpop.permute.xlu0 %1331 }
 0xc86   :  { %2876 = vmatpush3.xpose.msk.msra.mxu1 %vm190_vm2, %v1332_v8 }
 0xc87   :  { %2880 = vmatprep.subr.mxu1 %v3238_v41 }
 0xc89   :  { %2878 = vmatmul.mubr.msk.f32.vlgmr.msra.gmra.mrb[10].mxu1 %vm190_vm2, %v3610_v7  ;;  %v1499_v33 = vpop.permute.xlu0 %1498 }
 0xc8a   :  { %2882 = vmatprep.mubr.msk.f32.mxu1 %vm3239_vm1, %v3238_v41 }
 0xd5c   :  { %v1403_v42 = vpop.f32.mrb[10].mxu1 }
 0xd5d   :  { %v1407_v9 = vmul.f32 0.25, %v1403_v42  ;;  %v2879_v10 = vpop.f32.mrb[11].mxu1 }
 0xd5f   :  { %v1408_v13 = vadd.f32 %v1407_v9, %v3409_v62 }
 0xd61   :  { %v1409_v14 = vsel %vm267_vm7, %v1408_v13, -inf }
 0xd62   :  { %1410 = vmax.xlane.f32.xlu1 %v1409_v14 }
 0xd73   :  { %1420 = vrot.lane.b32.xlu1 %v3610_v7, %s3246_s27 }
 0xdef   :  { %v1411_v15 = vpop.xlane.xlu1 %1410 }
 0xdf0   :  { %v1412_v16 = vsub.f32 %v1408_v13, %v1411_v15 }
 0xdf2   :  { %v1413_v17 = vmul.f32 1.442695, %v1412_v16 }
 0xdf3   :  { %v1421_v20 = vpop.permute.xlu1 %1420 }
 0xdf4   :  { %3210 = vpow2.f32 %v1413_v17  ;;  %2881 = vmatpush3.msra.mxu1 %v1421_v20 }
 0xdf5   :  { %2885 = vmatprep.subr.mxu1 %v3238_v41 }
 0xdfe   :  { %v3211_v21 = vpop.eup %3210 }
 0xdff   :  { %v1415_v22 = vsel %vm267_vm7, %v3211_v21, 0.0 }
 0xe00   :  { %1416 = vadd.xlane.f32.xlu1 %v1415_v22 }
 0xe11   :  { %1496 = vrot.lane.b32.xlu1 %v3610_v7, %s3242_s24 }
 0xe15   :  { %1669 = vrot.lane.b32.xlu1 %v3608_v5, %s3241_s23 }
 0xe8d   :  { %v1417_v29 = vpop.xlane.xlu1 %1416 }
 0xe8e   :  { %3212 = vrcp.f32 %v1417_v29 }
 0xe91   :  { %v1497_v34 = vpop.permute.xlu1 %1496 }
 0xe95   :  { %v1670_v48 = vpop.permute.xlu1 %1669 }
 0xe98   :  { %v3213_v24 = vpop.eup %3212 }
 0xe99   :  { %v1419_v25 = vmul.f32 %v3213_v24, %v3211_v21 }
 0xe9b   :  { %2883 = vmatmul.mubr.msk.f32.vlgmr.msra.gmra.mrb[12].mxu1 %vm267_vm7, %v1419_v25 }
 0xe9c   :  { %2886 = vmatpush3.xpose.msk.msra.mxu1 %vm190_vm2, %v1499_v33  ;;  %2887 = vmatprep.mubr.msk.f32.mxu1 %vm3239_vm1, %v3238_v41 }
 0xe9d   :  { %2890 = vmatprep.subr.mxu1 %v3238_v41 }
 0xe9f   :  { %2888 = vmatmul.mubr.msk.f32.vlgmr.msra.gmra.mrb[14].mxu1 %vm190_vm2, %v1497_v34 }
 0xea0   :  { %2892 = vmatprep.mubr.msk.f32.mxu1 %vm3239_vm1, %v3238_v41 }
 0xf6e   :  { %v1492_v27 = vpop.f32.mrb[12].mxu1 }
 0xf6f   :  { %v2884_v31 = vpop.f32.mrb[13].mxu1 }
 0xf72   :  { %v1570_v32 = vpop.f32.mrb[14].mxu1 }
 0xf73   :  { %v1574_v35 = vmul.f32 0.25, %v1570_v32  ;;  %v2889_v36 = vpop.f32.mrb[15].mxu1 }
 0xf74   :  { %v2589_v36 = vld [vmem:[%s3904_s4 + $0x28] sm:$0xff] }
 0xf75   :  { %v1575_v37 = vadd.f32 %v1574_v35, %v3409_v62  ;;  %v2588_v35 = vld [vmem:[%s3904_s4 + $0x20] sm:$0xff] }
 0xf77   :  { %v1576_v38 = vsel %vm267_vm7, %v1575_v37, -inf }
 0xf78   :  { %1577 = vmax.xlane.f32.xlu0 %v1576_v38  ;;  %v3071_v38 = vpack.c.bf16 %v2589_v36, %v2588_v35  ;;  %v2601_v36 = vld [vmem:[%s3906_s6 + $0x88] sm:$0xff] }
 0xf8e   :  { %1587 = vrot.lane.b32.xlu0 %v3610_v7, %s3245_s1 }
 0xf92   :  { %1836 = vrot.lane.b32.xlu0 %v3608_v5, %s3240_s22 }
0x1005   :  { %v1578_v39 = vpop.xlane.xlu0 %1577 }
0x1006   :  { %v1579_v40 = vsub.f32 %v1575_v37, %v1578_v39  ;;  %v2590_v37 = vld [vmem:[%s3904_s4 + $0x30] sm:$0xff] }
0x1008   :  { %v1580_v1 = vmul.f32 1.442695, %v1579_v40 }
0x1009   :  { %v1588_v0 = vpop.permute.xlu0 %1587 }
0x100a   :  { %3214 = vpow2.f32 %v1580_v1  ;;  %2891 = vmatpush3.msra.mxu1 %v1588_v0 }
0x100b   :  { %2895 = vmatprep.subr.mxu1 %v3238_v41 }
0x100d   :  { %v1837_v43 = vpop.permute.xlu0 %1836 }
0x100e   :  { %2906 = vmatpush3.xpose.msk.msra.mxu0 %vm190_vm2, %v1837_v43 }
0x100f   :  { %3072 = vmatprep.subr.bf16.mxu0 %v3071_v38 }
0x1014   :  { %v3215_v62 = vpop.eup %3214 }
0x1015   :  { %v1582_v45 = vsel %vm267_vm7, %v3215_v62, 0.0 }
0x1016   :  { %1583 = vadd.xlane.f32.xlu1 %v1582_v45 }
0x1027   :  { %1834 = vrot.lane.b32.xlu1 %v3608_v5, %s3242_s24 }
0x10a3   :  { %v1584_v50 = vpop.xlane.xlu1 %1583 }
0x10a4   :  { %3216 = vrcp.f32 %v1584_v50 }
0x10a7   :  { %v1835_v52 = vpop.permute.xlu1 %1834 }
0x10a8   :  { %2908 = vmatmul.mubr.msk.f32.vlgmr.msra.gmra.mrb[16].mxu0 %vm190_vm2, %v1835_v52 }
0x10a9   :  { %3074 = vmatpush3.bf16.msra.mxu0 %v3071_v38  ;;  %v2603_v38 = vld [vmem:[%s3906_s6 + $0x98] sm:$0xff] }
0x10ae   :  { %v3217_v54 = vpop.eup %3216 }
0x10af   :  { %v1586_v55 = vmul.f32 %v3217_v54, %v3215_v62 }
0x10b1   :  { %2893 = vmatmul.mubr.msk.f32.vlgmr.msra.gmra.mrb[16].mxu1 %vm267_vm7, %v1586_v55 }
0x10b2   :  { %2896 = vmatpush3.xpose.msk.msra.mxu1 %vm190_vm2, %v1670_v48  ;;  %2897 = vmatprep.mubr.msk.f32.mxu1 %vm3239_vm1, %v3238_v41  ;;  %v2097_v48 = vrot.slane %v3595_v53, %v954_v23 }
0x10b3   :  { %2900 = vmatprep.subr.mxu1 %v3238_v41 }
0x10b5   :  { %2898 = vmatmul.mubr.msk.f32.vlgmr.msra.gmra.mrb[18].mxu1 %vm190_vm2, %v3608_v5 }
0x10b6   :  { %2902 = vmatprep.mubr.msk.f32.mxu1 %vm3239_vm1, %v3238_v41 }
0x117b   :  { %v1908_v46 = vpop.f32.mrb[16].mxu0 }
0x117c   :  { %v1912_v56 = vmul.f32 0.25, %v1908_v46  ;;  %v2909_v57 = vpop.f32.mrb[17].mxu0 }
0x117e   :  { %v1913_v47 = vadd.f32 %v1912_v56, %v3417_v11 }
0x1180   :  { %v1914_v58 = vsel %vm267_vm7, %v1913_v47, -inf }
0x1181   :  { %1915 = vmax.xlane.f32.xlu1 %v1914_v58 }
0x1184   :  { %v1659_v59 = vpop.f32.mrb[16].mxu1 }
0x1185   :  { %v2894_v60 = vpop.f32.mrb[17].mxu1 }
0x1188   :  { %v1741_v2 = vpop.f32.mrb[18].mxu1 }
0x1189   :  { %v1745_v3 = vmul.f32 0.25, %v1741_v2  ;;  %v2899_v4 = vpop.f32.mrb[19].mxu1 }
0x118b   :  { %v1746_v6 = vadd.f32 %v1745_v3, %v3417_v11 }
0x118d   :  { %v1747_v8 = vsel %vm267_vm7, %v1746_v6, -inf }
0x118e   :  { %1748 = vmax.xlane.f32.xlu0 %v1747_v8  ;;  %v2594_v8 = vld [vmem:[%s3905_s5 + $0x20] sm:$0xff] }
0x1192   :  { %1925 = vrot.lane.b32.xlu1 %v3608_v5, %s3245_s1 }
0x1196   :  { %1664 = vrot.lane.b32.xlu1 %v1659_v59, %s3247_s14 }
0x120e   :  { %v1916_v42 = vpop.xlane.xlu1 %1915 }
0x120f   :  { %v1917_v9 = vsub.f32 %v1913_v47, %v1916_v42  ;;  %v2595_v42 = vld [vmem:[%s3905_s5 + $0x28] sm:$0xff] }
0x1211   :  { %v1918_v10 = vmul.f32 1.442695, %v1917_v9  ;;  %v3079_v9 = vpack.c.bf16 %v2595_v42, %v2594_v8 }
0x1212   :  { %v1926_v13 = vpop.permute.xlu1 %1925 }
0x1213   :  { %3218 = vpow2.f32 %v1918_v10  ;;  %v2596_v10 = vld [vmem:[%s3905_s5 + $0x30] sm:$0xff] }
0x1216   :  { %v1665_v14 = vpop.permute.xlu1 %1664 }
0x1217   :  { %v1667_v15 = vsel %vm190_vm2, %v1492_v27, %v1665_v14 }
0x1218   :  { %2923 = vmatprep.mubr.msk.f32.mxu0 %vm58_vm0, %v1667_v15 }
0x121b   :  { %v1749_v16 = vpop.xlane.xlu0 %1748 }
0x121c   :  { %v1750_v11 = vsub.f32 %v1746_v6, %v1749_v16 }
0x121d   :  { %v3219_v17 = vpop.eup %3218 }
0x121e   :  { %v1751_v20 = vmul.f32 1.442695, %v1750_v11  ;;  %v1920_v21 = vsel %vm267_vm7, %v3219_v17, 0.0 }
0x121f   :  { %1921 = vadd.xlane.f32.xlu0 %v1920_v21 }
0x1220   :  { %3220 = vpow2.f32 %v1751_v20 }
0x122a   :  { %v3221_v22 = vpop.eup %3220 }
0x122b   :  { %v1753_v29 = vsel %vm267_vm7, %v3221_v22, 0.0 }
0x122c   :  { %1754 = vadd.xlane.f32.xlu0 %v1753_v29 }
0x1242   :  { %1758 = vrot.lane.b32.xlu0 %v3608_v5, %s3246_s27 }
0x12ac   :  { %v1922_v24 = vpop.xlane.xlu0 %1921 }
0x12b9   :  { %v1755_v25 = vpop.xlane.xlu0 %1754 }
0x12ba   :  { %3222 = vrcp.f32 %v1755_v25  ;;  %v2135_v25 = vrot.slane %v3595_v53, %v992_v63  ;;  %v2602_v63 = vld [vmem:[%s3906_s6 + $0x90] sm:$0xff] }
0x12bb   :  { %3224 = vrcp.f32 %v1922_v24 }
0x12bd   :  { %v1759_v33 = vpop.permute.xlu0 %1758 }
0x12be   :  { %2901 = vmatpush3.msra.mxu1 %v1759_v33 }
0x12bf   :  { %2910 = vmatprep.subr.mxu1 %v3238_v41 }
0x12c4   :  { %v3223_v34 = vpop.eup %3222 }
0x12c5   :  { %v1757_v27 = vmul.f32 %v3223_v34, %v3221_v22  ;;  %v3225_v31 = vpop.eup %3224  ;;  %v2129_v22 = vrot.slane %v3595_v53, %v986_v61  ;;  %v2600_v61 = vld [vmem:[%s3906_s6 + $0x80] sm:$0xff] }
0x12c6   :  { %v1924_v32 = vmul.f32 %v3225_v31, %v3219_v17 }
0x12c7   :  { %2903 = vmatmul.mubr.msk.f32.vlgmr.msra.gmra.mrb[20].mxu1 %vm267_vm7, %v1757_v27 }
0x12c8   :  { %2911 = vmatpush3.msra.mxu1 %v1926_v13  ;;  %2912 = vmatprep.mubr.msk.f32.mxu1 %vm3239_vm1, %v3238_v41  ;;  %v2591_v41 = vld [vmem:[%s3904_s4 + $0x38] sm:$0xff] }
0x12c9   :  { %v3075_v39 = vpack.c.bf16 %v2591_v41, %v2590_v37  ;;  %3080 = vmatprep.subr.bf16.mxu1 %v3079_v9  ;;  %v2597_v13 = vld [vmem:[%s3905_s5 + $0x38] sm:$0xff]  ;;  %v3087_v37 = vpack.c.bf16 %v2601_v36, %v2600_v61  ;;  %v3091_v41 = vpack.c.bf16 %v2603_v38, %v2602_v63 }
0x12ca   :  { %v3083_v14 = vpack.c.bf16 %v2597_v13, %v2596_v10  ;;  %v2400_v63 = vld [vmem:[%s3907_s7 + $0x18] sm:$0xff] }
0x12cb   :  { %2913 = vmatmul.mubr.msk.f32.vlgmr.msra.gmra.mrb[22].mxu1 %vm267_vm7, %v1924_v32  ;;  %3076 = vmatprep.subr.bf16.mxu0 %v3075_v39 }
0x12cc   :  { %3078 = vmatpush3.bf16.msra.mxu0 %v3075_v39  ;;  %3082 = vmatpush3.bf16.msra.mxu1 %v3079_v9  ;;  %v2604_v39 = vld [vmem:[%s3906_s6 + $0xa0] sm:$0xff] }
0x12cd   :  { %3084 = vmatprep.subr.bf16.mxu1 %v3083_v14  ;;  %3088 = vmatprep.subr.bf16.mxu0 %v3087_v37 }
0x12d0   :  { %3086 = vmatpush3.bf16.msra.mxu1 %v3083_v14 }
0x139a   :  { %v1830_v40 = vpop.f32.mrb[20].mxu1 }
0x139b   :  { %v2904_v1 = vpop.f32.mrb[21].mxu1 }
0x139e   :  { %v1997_v0 = vpop.f32.mrb[22].mxu1 }
0x139f   :  { %2002 = vrot.lane.b32.xlu1 %v1997_v0, %s3247_s14  ;;  %v2914_v43 = vpop.f32.mrb[23].mxu1  ;;  %v2606_v0 = vld [vmem:[%s3906_s6 + $0xb0] sm:$0xff] }
0x13a0   :  { %v2607_v43 = vld [vmem:[%s3906_s6 + $0xb8] sm:$0xff] }
0x1411   :  { %v2003_v62 = vpop.permute.xlu1 %2002 }
0x1412   :  { %v2005_v45 = vsel %vm190_vm2, %v1830_v40, %v2003_v62  ;;  %v2605_v40 = vld [vmem:[%s3906_s6 + $0xa8] sm:$0xff]  ;;  %v3099_v62 = vpack.c.bf16 %v2607_v43, %v2606_v0  ;;  %v2404_v0 = vld [vmem:[%s3907_s7 + $0x38] sm:$0xff] }
0x1413   :  { %2924 = vmatmul.mubr.msk.f32.vlgmr.msra.gmra.mrb[18].mxu0 %vm58_vm0, %v2005_v45  ;;  %v3095_v1 = vpack.c.bf16 %v2605_v40, %v2604_v39  ;;  %v2608_v45 = vld [vmem:[%s3906_s6 + $0xc0] sm:$0xff]  ;;  %v2402_v39 = vld [vmem:[%s3907_s7 + $0x28] sm:$0xff] }
0x1414   :  { %3090 = vmatpush3.bf16.msra.mxu0 %v3087_v37 }
0x1415   :  { %3092 = vmatprep.subr.bf16.mxu0 %v3091_v41 }
0x1418   :  { %3094 = vmatpush3.bf16.msra.mxu0 %v3091_v41  ;;  %v2401_v41 = vld [vmem:[%s3907_s7 + $0x20] sm:$0xff] }
0x1419   :  { %3096 = vmatprep.subr.bf16.mxu0 %v3095_v1  ;;  %v3131_v40 = vpack.c.bf16 %v2402_v39, %v2401_v41 }
0x141c   :  { %3098 = vmatpush3.bf16.msra.mxu0 %v3095_v1  ;;  %v2403_v1 = vld [vmem:[%s3907_s7 + $0x30] sm:$0xff] }
0x141d   :  { %3100 = vmatprep.subr.bf16.mxu0 %v3099_v62  ;;  %v3137_v43 = vpack.c.bf16 %v2404_v0, %v2403_v1 }
0x1420   :  { %3102 = vmatpush3.bf16.msra.mxu0 %v3099_v62  ;;  %v2405_v62 = vld [vmem:[%s3907_s7 + $0x40] sm:$0xff] }
0x14e6   :  { %v2925_v50 = vpop.f32.mrb[18].mxu0 }
0x14e7   :  { %v2093_v52 = vadd.f32 %v2925_v50, %v3567_v18  ;;  %v2083_v54 = vpop.f32.mrb[19].mxu0  ;;  %v2610_v50 = vld [vmem:[%s3906_s6 + $0xd0] sm:$0xff] }
0x14e8   :  { %v2092_v55 = vadd.f32 %v2083_v54, %v3569_v19  ;;  %v2611_v54 = vld [vmem:[%s3906_s6 + $0xd8] sm:$0xff] }
0x14e9   :  { %v3699_v46 = vadd.f32 %v2097_v48, %v2093_v52 }
0x14ea   :  { %v3701_v56 = vadd.f32 %v2097_v48, %v2092_v55  ;;  %v2609_v48 = vld [vmem:[%s3906_s6 + $0xc8] sm:$0xff]  ;;  %v3107_v55 = vpack.c.bf16 %v2611_v54, %v2610_v50  ;;  %v2407_v50 = vld [vmem:[%s3907_s7 + $0x50] sm:$0xff] }
0x14eb   :  { %v2103_v57 = vsel %vm58_vm0, %v3699_v46, 0.0  ;;  %v3103_v52 = vpack.c.bf16 %v2609_v48, %v2608_v45  ;;  %v2406_v45 = vld [vmem:[%s3907_s7 + $0x48] sm:$0xff] }
0x14ec   :  { %2104 = vadd.xlane.f32.xlu1 %v2103_v57  ;;  %v2100_v47 = vsel %vm58_vm0, %v3701_v56, 0.0  ;;  %v2612_v57 = vld [vmem:[%s3906_s6 + $0xe0] sm:$0xff]  ;;  %v3143_v48 = vpack.c.bf16 %v2406_v45, %v2405_v62 }
0x14ed   :  { %2101 = vadd.xlane.f32.xlu0 %v2100_v47  ;;  %3104 = vmatprep.subr.bf16.mxu0 %v3103_v52  ;;  %v2613_v47 = vld [vmem:[%s3906_s6 + $0xe8] sm:$0xff] }
0x14ee   :  { %3106 = vmatpush3.bf16.msra.mxu0 %v3103_v52  ;;  %v2408_v52 = vld [vmem:[%s3907_s7 + $0x58] sm:$0xff] }
0x14ef   :  { %3108 = vmatprep.subr.bf16.mxu0 %v3107_v55  ;;  %v3149_v54 = vpack.c.bf16 %v2408_v52, %v2407_v50 }
0x14f2   :  { %3110 = vmatpush3.bf16.msra.mxu0 %v3107_v55 }
0x1579   :  { %v2105_v58 = vpop.xlane.xlu1 %2104 }
0x157a   :  { %v2107_v23 = vmul.f32 0.03125, %v2105_v58  ;;  %v2102_v59 = vpop.xlane.xlu0 %2101  ;;  %v3111_v58 = vpack.c.bf16 %v2613_v47, %v2612_v57 }
0x157b   :  { %v2106_v60 = vmul.f32 0.03125, %v2102_v59  ;;  %v2615_v59 = vld [vmem:[%s3906_s6 + $0xf8] sm:$0xff] }
0x157c   :  { %v2109_v18 = vsub.f32 %v3699_v46, %v2107_v23  ;;  %v2614_v23 = vld [vmem:[%s3906_s6 + $0xf0] sm:$0xff]  ;;  %3112 = vmatprep.subr.bf16.mxu0 %v3111_v58 }
0x157d   :  { %v2108_v19 = vsub.f32 %v3701_v56, %v2106_v60  ;;  %v3115_v60 = vpack.c.bf16 %v2615_v59, %v2614_v23  ;;  %3114 = vmatpush3.bf16.msra.mxu0 %v3111_v58 }
0x157e   :  { %v2111_v4 = vmul.f32 %v2109_v18, %v2109_v18 }
0x157f   :  { %v2110_v2 = vmul.f32 %v2108_v19, %v2108_v19  ;;  %3116 = vmatprep.subr.bf16.mxu0 %v3115_v60 }
0x1580   :  { %v2115_v6 = vsel %vm58_vm0, %v2111_v4, 0.0 }
0x1581   :  { %v2112_v3 = vsel %vm58_vm0, %v2110_v2, 0.0  ;;  %3118 = vmatpush3.bf16.msra.mxu0 %v3115_v60 }
0x1582   :  { %2113 = vadd.xlane.f32.xlu0 %v2112_v3 }
0x1586   :  { %2116 = vadd.xlane.f32.xlu0 %v2115_v6 }
0x160f   :  { %v2114_v15 = vpop.xlane.xlu0 %2113 }
0x1610   :  { %v2118_v16 = vmul.f32 0.03125, %v2114_v15 }
0x1612   :  { %v2120_v11 = vadd.f32 1e-05, %v2118_v16 }
0x1613   :  { %v2117_v17 = vpop.xlane.xlu0 %2116 }
0x1614   :  { %3226 = vrsqrt.f32 %v2120_v11  ;;  %v2119_v20 = vmul.f32 0.03125, %v2117_v17 }
0x1616   :  { %v2121_v21 = vadd.f32 1e-05, %v2119_v20 }
0x1618   :  { %3228 = vrsqrt.f32 %v2121_v21 }
0x161e   :  { %v3227_v29 = vpop.eup %3226 }
0x161f   :  { %v2124_v24 = vmul.f32 %v3227_v29, %v2108_v19 }
0x1621   :  { %v2130_v33 = vmul.f32 %v2129_v22, %v2124_v24 }
0x1622   :  { %v3229_v34 = vpop.eup %3228 }
0x1623   :  { %v2125_v27 = vmul.f32 %v3229_v34, %v2109_v18  ;;  %v2136_v31 = vadd.f32 %v2135_v25, %v2130_v33  ;;  %v2146_v18 = vrot.slane %v3595_v53, %v1002_v44  ;;  %v2343_v33 = vrot.slane %v3595_v53, %v1198_v12  ;;  %v2397_v12 = vld [vmem:[%s3907_s7] sm:$0xff]  ;;  %v2398_v53 = vld [vmem:[%s3907_s7 + $0x8] sm:$0xff] }
0x1625   :  { %v2131_v32 = vmul.f32 %v2129_v22, %v2125_v27  ;;  %2934 = vmatprep.mubr.msk.f32.mxu1 %vm58_vm0, %v2136_v31 }
0x1627   :  { %v2137_v35 = vadd.f32 %v2135_v25, %v2131_v32 }
0x1629   :  { %2935 = vmatmul.mubr.msk.f32.vlgmr.msra.gmra.mrb[24].mxu1 %vm58_vm0, %v2137_v35 }
0x16fc   :  { %v2936_v19 = vpop.f32.mrb[24].mxu1 }
0x16fd   :  { %v2225_v2 = vadd.f32 %v2936_v19, %v2146_v18  ;;  %v2219_v3 = vpop.f32.mrb[25].mxu1 }
0x16fe   :  { %v2220_v4 = vadd.f32 %v2219_v3, %v2146_v18  ;;  %v2409_v3 = vld [vmem:[%s3907_s7 + $0x60] sm:$0xff] }
0x16ff   :  { %v2229_v6 = vmul.f32 %v2225_v2, %v2225_v2 }
0x1700   :  { %v2228_v8 = vmul.f32 %v2220_v4, %v2220_v4 }
0x1701   :  { %v2231_v42 = vmul.f32 %v2229_v6, %v2225_v2 }
0x1702   :  { %v2230_v9 = vmul.f32 %v2228_v8, %v2220_v4  ;;  %v2412_v8 = vld [vmem:[%s3907_s7 + $0x78] sm:$0xff] }
0x1703   :  { %v2233_v10 = vmul.f32 0.044715, %v2231_v42 }
0x1704   :  { %v2232_v13 = vmul.f32 0.044715, %v2230_v9 }
0x1705   :  { %v2235_v14 = vadd.f32 %v2233_v10, %v2225_v2 }
0x1706   :  { %v2234_v15 = vadd.f32 %v2232_v13, %v2220_v4 }
0x1707   :  { %v2237_v16 = vmul.f32 0.7978846, %v2235_v14 }
0x1708   :  { %v2236_v11 = vmul.f32 0.7978846, %v2234_v15 }
0x1709   :  { %3230 = vtanh.f32 %v2237_v16 }
0x170a   :  { %3232 = vtanh.f32 %v2236_v11 }
0x1713   :  { %v3231_v17 = vpop.eup %3230 }
0x1714   :  { %v3233_v20 = vpop.eup %3232  ;;  %v2241_v21 = vadd.f32 1.0, %v3231_v17 }
0x1715   :  { %v2240_v44 = vadd.f32 1.0, %v3233_v20 }
0x1716   :  { %v2243_v22 = vmul.f32 0.5, %v2241_v21  ;;  %v35_v21 = vld [vmem:[%s3902_s2 + $0x10] sm:$0xff] }
0x1717   :  { %v2242_v29 = vmul.f32 0.5, %v2240_v44  ;;  %v2388_v44 = vrot.slane %v35_v21, %v3333_v28 }
0x1718   :  { %v2245_v25 = vmul.f32 %v2243_v22, %v2225_v2 }
0x1719   :  { %v2244_v24 = vmul.f32 %v2242_v29, %v2220_v4  ;;  %v2410_v4 = vld [vmem:[%s3907_s7 + $0x68] sm:$0xff] }
0x171a   :  { %v3155_v6 = vpack.c.bf16 %v2410_v4, %v2409_v3 }
0x171b   :  { %2969 = vmatprep.mubr.f32.mxu0 %v2244_v24 }
0x171c   :  { %2970 = vmatmul.mubr.f32.vlgmr.msra.gmra.mrb[20].mxu0 %v2245_v25  ;;  %v2394_v25 = vrot.slane %v35_v21, %v3341_v30 }
0x17ef   :  { %v2971_v34 = vpop.f32.mrb[20].mxu0 }
0x17f0   :  { %v2339_v27 = vadd.f32 %v2971_v34, %v3699_v46  ;;  %v2329_v31 = vpop.f32.mrb[21].mxu0  ;;  %v2399_v46 = vld [vmem:[%s3907_s7 + $0x10] sm:$0xff] }
0x17f1   :  { %v2338_v32 = vadd.f32 %v2329_v31, %v3701_v56  ;;  %v3119_v56 = vpack.c.bf16 %v2398_v53, %v2397_v12  ;;  %v3125_v38 = vpack.c.bf16 %v2400_v63, %v2399_v46 }
0x17f2   :  { %v2345_v35 = vadd.f32 %v2343_v33, %v2339_v27 }
0x17f3   :  { %v2344_v61 = vadd.f32 %v2343_v33, %v2338_v32  ;;  %3121 = vmatprep.subr.msk.bf16.mxu1 %vm3791_vm10, %v3119_v56 }
0x17f4   :  { %v2362_v36 = vsel %vm58_vm0, %v2345_v35, 0.0  ;;  %3124 = vmatpush3.bf16.xpose.msk.msra.mxu1 %vm3791_vm10, %v3119_v56 }
0x17f5   :  { %2363 = vadd.xlane.f32.xlu1 %v2362_v36  ;;  %v2359_v37 = vsel %vm58_vm0, %v2344_v61, 0.0  ;;  %3127 = vmatprep.subr.msk.bf16.mxu1 %vm3791_vm10, %v3125_v38 }
0x17f6   :  { %2360 = vadd.xlane.f32.xlu0 %v2359_v37 }
0x17fc   :  { %3130 = vmatpush3.bf16.xpose.msk.msra.mxu1 %vm3791_vm10, %v3125_v38 }
0x17fd   :  { %3133 = vmatprep.subr.msk.bf16.mxu1 %vm3791_vm10, %v3131_v40 }
0x1804   :  { %3136 = vmatpush3.bf16.xpose.msk.msra.mxu1 %vm3791_vm10, %v3131_v40 }
0x1805   :  { %3139 = vmatprep.subr.msk.bf16.mxu1 %vm3791_vm10, %v3137_v43 }
0x180c   :  { %3142 = vmatpush3.bf16.xpose.msk.msra.mxu1 %vm3791_vm10, %v3137_v43 }
0x180d   :  { %3145 = vmatprep.subr.msk.bf16.mxu1 %vm3791_vm10, %v3143_v48 }
0x1814   :  { %3148 = vmatpush3.bf16.xpose.msk.msra.mxu1 %vm3791_vm10, %v3143_v48 }
0x1815   :  { %3151 = vmatprep.subr.msk.bf16.mxu1 %vm3791_vm10, %v3149_v54 }
0x181c   :  { %3154 = vmatpush3.bf16.xpose.msk.msra.mxu1 %vm3791_vm10, %v3149_v54 }
0x181d   :  { %3157 = vmatprep.subr.msk.bf16.mxu1 %vm3791_vm10, %v3155_v6 }
0x1824   :  { %3160 = vmatpush3.bf16.xpose.msk.msra.mxu1 %vm3791_vm10, %v3155_v6 }
0x1882   :  { %v2364_v55 = vpop.xlane.xlu1 %2363 }
0x1883   :  { %v2366_v57 = vmul.f32 0.03125, %v2364_v55  ;;  %v2361_v47 = vpop.xlane.xlu0 %2360 }
0x1884   :  { %v2365_v58 = vmul.f32 0.03125, %v2361_v47 }
0x1885   :  { %v2368_v23 = vsub.f32 %v2345_v35, %v2366_v57 }
0x1886   :  { %v2367_v59 = vsub.f32 %v2344_v61, %v2365_v58 }
0x1887   :  { %v2370_v60 = vmul.f32 %v2368_v23, %v2368_v23 }
0x1888   :  { %v2369_v18 = vmul.f32 %v2367_v59, %v2367_v59 }
0x1889   :  { %v2374_v19 = vsel %vm58_vm0, %v2370_v60, 0.0 }
0x188a   :  { %2375 = vadd.xlane.f32.xlu1 %v2374_v19  ;;  %v2371_v2 = vsel %vm58_vm0, %v2369_v18, 0.0 }
0x188b   :  { %2372 = vadd.xlane.f32.xlu0 %v2371_v2 }
0x189b   :  { %2350 = vrot.lane.b32.xlu1 %v3608_v5, %s3248_s28  ;;  %v2411_v5 = vld [vmem:[%s3907_s7 + $0x70] sm:$0xff] }
0x189c   :  { %v3161_v42 = vpack.c.bf16 %v2412_v8, %v2411_v5 }
0x189e   :  { %3163 = vmatprep.subr.msk.bf16.mxu1 %vm3791_vm10, %v3161_v42 }
0x189f   :  { %3166 = vmatpush3.bf16.xpose.msk.msra.mxu1 %vm3791_vm10, %v3161_v42 }
0x18a1   :  { %2348 = vrot.lane.b32.xlu0 %v3610_v7, %s3248_s28 }
0x1917   :  { %v2376_v9 = vpop.xlane.xlu1 %2375 }
0x1918   :  { %v2378_v7 = vmul.f32 0.03125, %v2376_v9  ;;  %v2373_v10 = vpop.xlane.xlu0 %2372 }
0x1919   :  { %v2377_v13 = vmul.f32 0.03125, %v2373_v10 }
0x191a   :  { %v2380_v14 = vadd.f32 1e-05, %v2378_v7 }
0x191b   :  { %v2379_v15 = vadd.f32 1e-05, %v2377_v13  ;;  %v2351_v16 = vpop.permute.xlu1 %2350 }
0x191c   :  { %3234 = vrsqrt.f32 %v2380_v14  ;;  %v2356_v11 = vsel %vm2354_vm11, %v3389_v51, %v2351_v16  ;;  %v2349_v17 = vpop.permute.xlu0 %2348 }
0x191d   :  { %3236 = vrsqrt.f32 %v2379_v15  ;;  %2358 = vst [vmem:[%s3908_s9 + $0x8] sm:$0xff] %v2356_v11  ;;  %v2355_v20 = vsel %vm2354_vm11, %v3375_v49, %v2349_v17 }
0x191e   :  { %2357 = vst [vmem:[%s3908_s9] sm:$0xff] %v2355_v20 }
0x1926   :  { %v3235_v22 = vpop.eup %3234 }
0x1927   :  { %v3237_v51 = vpop.eup %3236  ;;  %v2384_v29 = vmul.f32 %v3235_v22, %v2368_v23 }
0x1928   :  { %v2383_v24 = vmul.f32 %v3237_v51, %v2367_v59 }
0x1929   :  { %v2390_v33 = vmul.f32 %v2388_v44, %v2384_v29 }
0x192a   :  { %v2389_v34 = vmul.f32 %v2388_v44, %v2383_v24 }
0x192b   :  { %v2396_v49 = vadd.f32 %v2394_v25, %v2390_v33 }
0x192c   :  { %v2395_v27 = vadd.f32 %v2394_v25, %v2389_v34 }
0x192e   :  { %3004 = vmatprep.mubr.msk.f32.mxu1 %vm58_vm0, %v2395_v27 }
0x192f   :  { %3005 = vmatmul.mubr.msk.f32.vlgmr.msra.gmra.mrb[26].mxu1 %vm58_vm0, %v2396_v49 }
0x1a02   :  { %v3006_v31 = vpop.f32.mrb[26].mxu1 }
0x1a03   :  { %2543 = vst [vmem:[%s3909_s8 + $0x8] sm:$0xff] %v3006_v31  ;;  %v2533_v28 = vpop.f32.mrb[27].mxu1 }
0x1a04   :  { %2542 = vst [vmem:[%s3909_s8] sm:$0xff] %v2533_v28 }

</bundles_post_ra>
